<compile_context>
chip_gen: v7x
topology: tpu7x:2x2x1
jax: 0.10.0
libtpu: 0.0.40
codegen_flags: <defaults>
</compile_context>

<pallas_src>
import jax
import jax.numpy as jnp
from jax import lax
from jax.experimental import pallas as pl
from jax.experimental.pallas import tpu as pltpu


def dwconv3d_kernel(xm_ref, xc_ref, xp_ref, w_ref, b_ref, o_ref, shift_ref):
    # xm/xc/xp_ref: (1, 1, H, W, Ct)   frames d-1 (clamped), d, d+1 (clamped)
    # w_ref:        (3, 3, 3, Ct)      depthwise taps, channels-last
    # b_ref:        (1, Ct)            per-channel bias
    # o_ref:        (1, 1, H, W, Ct)   output frame tile
    # shift_ref:    (3, 3, H + 2, W, Ct) scratch:
    #   shift_ref[f, s, r] = frame f, W-shifted by (s - 1) with zero fill,
    #   holding input row (r - 1); rows 0 and H+1 are the zero H-halo.
    _, _, H, W, Ct = o_ref.shape
    d = pl.program_id(1)
    nf = pl.num_programs(1)

    # Cancel the depth taps that would reach past the nf boundary (their frame
    # refs are clamped copies of a valid frame, so zero them via the weights).
    w_all = w_ref[...].astype(jnp.float32)                      # (3, 3, 3, Ct)
    valid_prev = (d > 0).astype(jnp.float32)
    valid_next = (d < nf - 1).astype(jnp.float32)
    w_frames = (w_all[0] * valid_prev, w_all[1], w_all[2] * valid_next)
    bias = b_ref[...].astype(jnp.float32)                       # (1, Ct)

    # Build the three W-shifted (sublane) views of each frame ONCE; reuse across
    # all 9 (kd, kh) taps.  Kept in the input dtype (no f32 shadow of x).
    zrow = jnp.zeros((W, Ct), shift_ref.dtype)
    zcol = jnp.zeros((H, 1, Ct), shift_ref.dtype)
    for f, frame_ref in enumerate((xm_ref, xc_ref, xp_ref)):
        frame = frame_ref[0, 0]                                 # (H, W, Ct)
        # s=0: out[:, w] = x[:, w-1] ; s=1: identity ; s=2: out[:, w] = x[:, w+1]
        shift_ref[f, 0, 1:H + 1] = jnp.concatenate([zcol, frame[:, :W - 1]], axis=1)
        shift_ref[f, 1, 1:H + 1] = frame
        shift_ref[f, 2, 1:H + 1] = jnp.concatenate([frame[:, 1:], zcol], axis=1)
        for s in range(3):
            shift_ref[f, s, 0] = zrow                           # H halo (top)
            shift_ref[f, s, H + 1] = zrow                       # H halo (bottom)

    # One output row per iteration: all 27 taps accumulate into an f32 register
    # tile; exactly one store per row.  Operand rows are loaded in the native
    # dtype and promoted per tap (no blanket f32 cast).
    def row_body(h, carry):
        acc = jnp.zeros((W, Ct), jnp.float32)
        for f in range(3):
            for kh in range(3):
                w_kh = w_frames[f][kh]                          # (3, Ct)
                for kw in range(3):
                    row = shift_ref[f, kw, h + kh]              # (W, Ct), aligned load
                    acc = acc + row.astype(jnp.float32) * w_kh[kw:kw + 1, :]
        o_ref[0, 0, h] = (acc + bias).astype(o_ref.dtype)
        return carry

    lax.fori_loop(0, H, row_body, 0)


def dwconv(x, weight, bias, nf, H, W):
    """DWConv forward.

    x:      (B, N, C) with N == nf * H * W
    weight: (C, 1, 3, 3, 3)  PyTorch depthwise Conv3d weight (O, I/g, kd, kh, kw)
    bias:   (C,)
    returns (B, N, C)
    """
    B, N, C = x.shape
    assert N == nf * H * W

    x5 = x.reshape(B, nf, H, W, C)                    # channels-last NDHWC
    w = jnp.transpose(weight[:, 0], (1, 2, 3, 0))     # (3, 3, 3, C)
    b = bias.reshape(1, C)

    # Lane-aligned channel tile when possible; otherwise the full C
    # (block_shape == full array dim is always legal).
    Ct = 128 if C % 128 == 0 else C
    n_ct = C // Ct

    frame_blk = (1, 1, H, W, Ct)
    in_specs = [
        pl.BlockSpec(frame_blk,
                     lambda bi, di, ci: (bi, jnp.maximum(di - 1, 0), 0, 0, ci)),
        pl.BlockSpec(frame_blk,
                     lambda bi, di, ci: (bi, di, 0, 0, ci)),
        pl.BlockSpec(frame_blk,
                     lambda bi, di, ci: (bi, jnp.minimum(di + 1, nf - 1), 0, 0, ci)),
        pl.BlockSpec((3, 3, 3, Ct), lambda bi, di, ci: (0, 0, 0, ci)),
        pl.BlockSpec((1, Ct), lambda bi, di, ci: (0, ci)),
    ]
    out_spec = pl.BlockSpec(frame_blk, lambda bi, di, ci: (bi, di, 0, 0, ci))

    # VMEM budget: 3 double-buffered input blocks + double-buffered output block
    # + shifted-slab scratch + headroom for in-kernel temporaries.
    itemsize = x.dtype.itemsize
    blk_bytes = H * W * Ct * itemsize
    scratch_bytes = 3 * 3 * (H + 2) * W * Ct * itemsize
    temp_bytes = 6 * H * W * Ct * 4
    est = 8 * blk_bytes + scratch_bytes + temp_bytes + 4 * (27 * Ct + Ct)
    vmem_limit = int(min(64 * 2**20, max(32 * 2**20, int(1.25 * est))))

    out = pl.pallas_call(
        dwconv3d_kernel,
        out_shape=jax.ShapeDtypeStruct((B, nf, H, W, C), x.dtype),
        grid_spec=pltpu.PrefetchScalarGridSpec(
            num_scalar_prefetch=0,
            grid=(B, nf, n_ct),
            in_specs=in_specs,
            out_specs=out_spec,
            scratch_shapes=[pltpu.VMEM((3, 3, H + 2, W, Ct), x.dtype)],
        ),
        compiler_params=pltpu.CompilerParams(
            dimension_semantics=("parallel", "parallel", "parallel"),
            vmem_limit_bytes=vmem_limit,
        ),
    )(x5, x5, x5, w, b)
    return out.reshape(B, N, C)


def dwconv_reference(x, weight, bias, nf, H, W):
    """Pure-JAX reference matching PyTorch semantics (NCDHW depthwise conv)."""
    B, N, C = x.shape
    x_ncdhw = x.reshape(B, nf, H, W, C).transpose(0, 4, 1, 2, 3)   # (B, C, nf, H, W)
    y = lax.conv_general_dilated(
        x_ncdhw, weight,
        window_strides=(1, 1, 1),
        padding=((1, 1), (1, 1), (1, 1)),
        dimension_numbers=("NCDHW", "OIDHW", "NCDHW"),
        feature_group_count=C,
    )
    y = y + bias[None, :, None, None, None]
    return y.reshape(B, C, N).transpose(0, 2, 1)                   # (B, N, C)


def _check(key, B, C, nf, H, W):
    N = nf * H * W
    kx, kw, kb = jax.random.split(key, 3)
    x = jax.random.normal(kx, (B, N, C), dtype=jnp.float32)
    weight = jax.random.normal(kw, (C, 1, 3, 3, 3), dtype=jnp.float32) * 0.1
    bias = jax.random.normal(kb, (C,), dtype=jnp.float32) * 0.1

    out = jax.block_until_ready(dwconv(x, weight, bias, nf, H, W))
    ref = jax.block_until_ready(dwconv_reference(x, weight, bias, nf, H, W))

    assert out.shape == (B, N, C)
    err = jnp.max(jnp.abs(out - ref))
    assert jnp.allclose(out, ref, atol=1e-4, rtol=1e-4), f"max abs err {err}"


if __name__ == "__main__":
    key = jax.random.PRNGKey(0)
    k1, k2 = jax.random.split(key)
    # Small shape consistent with the module (dim=C channels, N = nf*H*W tokens).
    _check(k1, B=2, C=4, nf=4, H=4, W=4)
    # Exercise the lane-aligned channel-tiling path (C % 128 == 0 -> Ct = 128,
    # two channel tiles) plus depth/height/width boundary handling.
    _check(k2, B=1, C=256, nf=3, H=4, W=5)
    print("KERNEL_OK")
</pallas_src>

<mosaic_0001>
module attributes {stable_mosaic.version = 11 : i64} {
  func.func @dwconv3d_kernel(%arg0: i32, %arg1: i32, %arg2: i32, %arg3: memref<1x1x4x4x4xf32, #tpu.memory_space<vmem>>, %arg4: memref<1x1x4x4x4xf32, #tpu.memory_space<vmem>>, %arg5: memref<1x1x4x4x4xf32, #tpu.memory_space<vmem>>, %arg6: memref<3x3x3x4xf32, #tpu.memory_space<vmem>>, %arg7: memref<1x4xf32, #tpu.memory_space<vmem>>, %arg8: memref<1x1x4x4x4xf32, #tpu.memory_space<vmem>>, %arg9: memref<3x3x6x4x4xf32, #tpu.memory_space<vmem>>) attributes {dimension_semantics = [#tpu.dimension_semantics<parallel>, #tpu.dimension_semantics<parallel>, #tpu.dimension_semantics<parallel>], iteration_bounds = array<i64: 2, 4, 1>, scalar_prefetch = 0 : i64, scratch_operands = 1 : i64, tpu.core_type = #tpu.core_type<tc>, window_params = [{transform_indices = @transform_0, window_bounds = array<i64: 1, 1, 4, 4, 4>}, {transform_indices = @transform_1, window_bounds = array<i64: 1, 1, 4, 4, 4>}, {transform_indices = @transform_2, window_bounds = array<i64: 1, 1, 4, 4, 4>}, {transform_indices = @transform_3, window_bounds = array<i64: 3, 3, 3, 4>}, {transform_indices = @transform_4, window_bounds = array<i64: 1, 4>}, {transform_indices = @transform_5, window_bounds = array<i64: 1, 1, 4, 4, 4>}]} {
    %c0 = arith.constant 0 : index
    %c0_0 = arith.constant 0 : index
    %c0_1 = arith.constant 0 : index
    %c0_2 = arith.constant 0 : index
    %0 = vector.load %arg6[%c0, %c0_0, %c0_1, %c0_2] : memref<3x3x3x4xf32, #tpu.memory_space<vmem>>, vector<3x3x3x4xf32>
    %c0_i32 = arith.constant 0 : i32
    %1 = arith.cmpi sgt, %arg1, %c0_i32 : i32
    %2 = arith.extui %1 : i1 to i32
    %3 = arith.sitofp %2 : i32 to f32
    %c3_i32 = arith.constant 3 : i32
    %4 = arith.cmpi slt, %arg1, %c3_i32 : i32
    %5 = arith.extui %4 : i1 to i32
    %6 = arith.sitofp %5 : i32 to f32
    %7 = vector.extract_strided_slice %0 {offsets = [0, 0, 0, 0], sizes = [1, 3, 3, 4], strides = [1, 1, 1, 1]} : vector<3x3x3x4xf32> to vector<1x3x3x4xf32>
    %8 = vector.shape_cast %7 : vector<1x3x3x4xf32> to vector<3x3x4xf32>
    %9 = vector.broadcast %3 : f32 to vector<3x3x4xf32>
    %10 = arith.mulf %8, %9 : vector<3x3x4xf32>
    %11 = vector.extract_strided_slice %0 {offsets = [1, 0, 0, 0], sizes = [1, 3, 3, 4], strides = [1, 1, 1, 1]} : vector<3x3x3x4xf32> to vector<1x3x3x4xf32>
    %12 = vector.shape_cast %11 : vector<1x3x3x4xf32> to vector<3x3x4xf32>
    %13 = vector.extract_strided_slice %0 {offsets = [2, 0, 0, 0], sizes = [1, 3, 3, 4], strides = [1, 1, 1, 1]} : vector<3x3x3x4xf32> to vector<1x3x3x4xf32>
    %14 = vector.shape_cast %13 : vector<1x3x3x4xf32> to vector<3x3x4xf32>
    %15 = vector.broadcast %6 : f32 to vector<3x3x4xf32>
    %16 = arith.mulf %14, %15 : vector<3x3x4xf32>
    %c0_3 = arith.constant 0 : index
    %c0_4 = arith.constant 0 : index
    %17 = vector.load %arg7[%c0_3, %c0_4] : memref<1x4xf32, #tpu.memory_space<vmem>>, vector<1x4xf32>
    %cst = arith.constant 0.000000e+00 : f32
    %18 = vector.broadcast %cst : f32 to vector<4x4xf32>
    %cst_5 = arith.constant 0.000000e+00 : f32
    %19 = vector.broadcast %cst_5 : f32 to vector<4x1x4xf32>
    %c0_6 = arith.constant 0 : index
    %c0_7 = arith.constant 0 : index
    %c0_8 = arith.constant 0 : index
    %c0_9 = arith.constant 0 : index
    %c0_10 = arith.constant 0 : index
    %20 = vector.load %arg3[%c0_6, %c0_7, %c0_8, %c0_9, %c0_10] : memref<1x1x4x4x4xf32, #tpu.memory_space<vmem>>, vector<1x1x4x4x4xf32>
    %21 = vector.shape_cast %20 : vector<1x1x4x4x4xf32> to vector<4x4x4xf32>
    %22 = vector.extract_strided_slice %21 {offsets = [0, 0, 0], sizes = [4, 3, 4], strides = [1, 1, 1]} : vector<4x4x4xf32> to vector<4x3x4xf32>
    %23 = tpu.concatenate %19, %22 in 1 : vector<4x1x4xf32>, vector<4x3x4xf32> -> vector<4x4x4xf32>
    %c0_11 = arith.constant 0 : index
    %c0_12 = arith.constant 0 : index
    %c1 = arith.constant 1 : index
    %c0_13 = arith.constant 0 : index
    %c0_14 = arith.constant 0 : index
    %24 = vector.load %arg9[%c0_11, %c0_12, %c1, %c0_13, %c0_14] : memref<3x3x6x4x4xf32, #tpu.memory_space<vmem>>, vector<1x1x4x4x4xf32>
    %25 = vector.shape_cast %24 : vector<1x1x4x4x4xf32> to vector<4x4x4xf32>
    %26 = vector.shape_cast %23 : vector<4x4x4xf32> to vector<1x1x4x4x4xf32>
    tpu.vector_store %arg9[%c0_11, %c0_12, %c1, %c0_13, %c0_14], %26 {strides = array<i32>} : memref<3x3x6x4x4xf32, #tpu.memory_space<vmem>>, vector<1x1x4x4x4xf32>,
    %c0_15 = arith.constant 0 : index
    %c1_16 = arith.constant 1 : index
    %c1_17 = arith.constant 1 : index
    %c0_18 = arith.constant 0 : index
    %c0_19 = arith.constant 0 : index
    %27 = vector.load %arg9[%c0_15, %c1_16, %c1_17, %c0_18, %c0_19] : memref<3x3x6x4x4xf32, #tpu.memory_space<vmem>>, vector<1x1x4x4x4xf32>
    %28 = vector.shape_cast %27 : vector<1x1x4x4x4xf32> to vector<4x4x4xf32>
    %29 = vector.shape_cast %21 : vector<4x4x4xf32> to vector<1x1x4x4x4xf32>
    tpu.vector_store %arg9[%c0_15, %c1_16, %c1_17, %c0_18, %c0_19], %29 {strides = array<i32>} : memref<3x3x6x4x4xf32, #tpu.memory_space<vmem>>, vector<1x1x4x4x4xf32>,
    %30 = vector.extract_strided_slice %21 {offsets = [0, 1, 0], sizes = [4, 3, 4], strides = [1, 1, 1]} : vector<4x4x4xf32> to vector<4x3x4xf32>
    %31 = tpu.concatenate %30, %19 in 1 : vector<4x3x4xf32>, vector<4x1x4xf32> -> vector<4x4x4xf32>
    %c0_20 = arith.constant 0 : index
    %c2 = arith.constant 2 : index
    %c1_21 = arith.constant 1 : index
    %c0_22 = arith.constant 0 : index
    %c0_23 = arith.constant 0 : index
    %32 = vector.load %arg9[%c0_20, %c2, %c1_21, %c0_22, %c0_23] : memref<3x3x6x4x4xf32, #tpu.memory_space<vmem>>, vector<1x1x4x4x4xf32>
    %33 = vector.shape_cast %32 : vector<1x1x4x4x4xf32> to vector<4x4x4xf32>
    %34 = vector.shape_cast %31 : vector<4x4x4xf32> to vector<1x1x4x4x4xf32>
    tpu.vector_store %arg9[%c0_20, %c2, %c1_21, %c0_22, %c0_23], %34 {strides = array<i32>} : memref<3x3x6x4x4xf32, #tpu.memory_space<vmem>>, vector<1x1x4x4x4xf32>,
    %c0_24 = arith.constant 0 : index
    %c0_25 = arith.constant 0 : index
    %c0_26 = arith.constant 0 : index
    %c0_27 = arith.constant 0 : index
    %c0_28 = arith.constant 0 : index
    %35 = vector.load %arg9[%c0_24, %c0_25, %c0_26, %c0_27, %c0_28] : memref<3x3x6x4x4xf32, #tpu.memory_space<vmem>>, vector<1x1x1x4x4xf32>
    %36 = vector.shape_cast %35 : vector<1x1x1x4x4xf32> to vector<4x4xf32>
    %37 = vector.shape_cast %18 : vector<4x4xf32> to vector<1x1x1x4x4xf32>
    tpu.vector_store %arg9[%c0_24, %c0_25, %c0_26, %c0_27, %c0_28], %37 {strides = array<i32>} : memref<3x3x6x4x4xf32, #tpu.memory_space<vmem>>, vector<1x1x1x4x4xf32>,
    %c0_29 = arith.constant 0 : index
    %c0_30 = arith.constant 0 : index
    %c5 = arith.constant 5 : index
    %c0_31 = arith.constant 0 : index
    %c0_32 = arith.constant 0 : index
    %38 = vector.load %arg9[%c0_29, %c0_30, %c5, %c0_31, %c0_32] : memref<3x3x6x4x4xf32, #tpu.memory_space<vmem>>, vector<1x1x1x4x4xf32>
    %39 = vector.shape_cast %38 : vector<1x1x1x4x4xf32> to vector<4x4xf32>
    %40 = vector.shape_cast %18 : vector<4x4xf32> to vector<1x1x1x4x4xf32>
    tpu.vector_store %arg9[%c0_29, %c0_30, %c5, %c0_31, %c0_32], %40 {strides = array<i32>} : memref<3x3x6x4x4xf32, #tpu.memory_space<vmem>>, vector<1x1x1x4x4xf32>,
    %c0_33 = arith.constant 0 : index
    %c1_34 = arith.constant 1 : index
    %c0_35 = arith.constant 0 : index
    %c0_36 = arith.constant 0 : index
    %c0_37 = arith.constant 0 : index
    %41 = vector.load %arg9[%c0_33, %c1_34, %c0_35, %c0_36, %c0_37] : memref<3x3x6x4x4xf32, #tpu.memory_space<vmem>>, vector<1x1x1x4x4xf32>
    %42 = vector.shape_cast %41 : vector<1x1x1x4x4xf32> to vector<4x4xf32>
    %43 = vector.shape_cast %18 : vector<4x4xf32> to vector<1x1x1x4x4xf32>
    tpu.vector_store %arg9[%c0_33, %c1_34, %c0_35, %c0_36, %c0_37], %43 {strides = array<i32>} : memref<3x3x6x4x4xf32, #tpu.memory_space<vmem>>, vector<1x1x1x4x4xf32>,
    %c0_38 = arith.constant 0 : index
    %c1_39 = arith.constant 1 : index
    %c5_40 = arith.constant 5 : index
    %c0_41 = arith.constant 0 : index
    %c0_42 = arith.constant 0 : index
    %44 = vector.load %arg9[%c0_38, %c1_39, %c5_40, %c0_41, %c0_42] : memref<3x3x6x4x4xf32, #tpu.memory_space<vmem>>, vector<1x1x1x4x4xf32>
    %45 = vector.shape_cast %44 : vector<1x1x1x4x4xf32> to vector<4x4xf32>
    %46 = vector.shape_cast %18 : vector<4x4xf32> to vector<1x1x1x4x4xf32>
    tpu.vector_store %arg9[%c0_38, %c1_39, %c5_40, %c0_41, %c0_42], %46 {strides = array<i32>} : memref<3x3x6x4x4xf32, #tpu.memory_space<vmem>>, vector<1x1x1x4x4xf32>,
    %c0_43 = arith.constant 0 : index
    %c2_44 = arith.constant 2 : index
    %c0_45 = arith.constant 0 : index
    %c0_46 = arith.constant 0 : index
    %c0_47 = arith.constant 0 : index
    %47 = vector.load %arg9[%c0_43, %c2_44, %c0_45, %c0_46, %c0_47] : memref<3x3x6x4x4xf32, #tpu.memory_space<vmem>>, vector<1x1x1x4x4xf32>
    %48 = vector.shape_cast %47 : vector<1x1x1x4x4xf32> to vector<4x4xf32>
    %49 = vector.shape_cast %18 : vector<4x4xf32> to vector<1x1x1x4x4xf32>
    tpu.vector_store %arg9[%c0_43, %c2_44, %c0_45, %c0_46, %c0_47], %49 {strides = array<i32>} : memref<3x3x6x4x4xf32, #tpu.memory_space<vmem>>, vector<1x1x1x4x4xf32>,
    %c0_48 = arith.constant 0 : index
    %c2_49 = arith.constant 2 : index
    %c5_50 = arith.constant 5 : index
    %c0_51 = arith.constant 0 : index
    %c0_52 = arith.constant 0 : index
    %50 = vector.load %arg9[%c0_48, %c2_49, %c5_50, %c0_51, %c0_52] : memref<3x3x6x4x4xf32, #tpu.memory_space<vmem>>, vector<1x1x1x4x4xf32>
    %51 = vector.shape_cast %50 : vector<1x1x1x4x4xf32> to vector<4x4xf32>
    %52 = vector.shape_cast %18 : vector<4x4xf32> to vector<1x1x1x4x4xf32>
    tpu.vector_store %arg9[%c0_48, %c2_49, %c5_50, %c0_51, %c0_52], %52 {strides = array<i32>} : memref<3x3x6x4x4xf32, #tpu.memory_space<vmem>>, vector<1x1x1x4x4xf32>,
    %c0_53 = arith.constant 0 : index
    %c0_54 = arith.constant 0 : index
    %c0_55 = arith.constant 0 : index
    %c0_56 = arith.constant 0 : index
    %c0_57 = arith.constant 0 : index
    %53 = vector.load %arg4[%c0_53, %c0_54, %c0_55, %c0_56, %c0_57] : memref<1x1x4x4x4xf32, #tpu.memory_space<vmem>>, vector<1x1x4x4x4xf32>
    %54 = vector.shape_cast %53 : vector<1x1x4x4x4xf32> to vector<4x4x4xf32>
    %55 = vector.extract_strided_slice %54 {offsets = [0, 0, 0], sizes = [4, 3, 4], strides = [1, 1, 1]} : vector<4x4x4xf32> to vector<4x3x4xf32>
    %56 = tpu.concatenate %19, %55 in 1 : vector<4x1x4xf32>, vector<4x3x4xf32> -> vector<4x4x4xf32>
    %c1_58 = arith.constant 1 : index
    %c0_59 = arith.constant 0 : index
    %c1_60 = arith.constant 1 : index
    %c0_61 = arith.constant 0 : index
    %c0_62 = arith.constant 0 : index
    %57 = vector.load %arg9[%c1_58, %c0_59, %c1_60, %c0_61, %c0_62] : memref<3x3x6x4x4xf32, #tpu.memory_space<vmem>>, vector<1x1x4x4x4xf32>
    %58 = vector.shape_cast %57 : vector<1x1x4x4x4xf32> to vector<4x4x4xf32>
    %59 = vector.shape_cast %56 : vector<4x4x4xf32> to vector<1x1x4x4x4xf32>
    tpu.vector_store %arg9[%c1_58, %c0_59, %c1_60, %c0_61, %c0_62], %59 {strides = array<i32>} : memref<3x3x6x4x4xf32, #tpu.memory_space<vmem>>, vector<1x1x4x4x4xf32>,
    %c1_63 = arith.constant 1 : index
    %c1_64 = arith.constant 1 : index
    %c1_65 = arith.constant 1 : index
    %c0_66 = arith.constant 0 : index
    %c0_67 = arith.constant 0 : index
    %60 = vector.load %arg9[%c1_63, %c1_64, %c1_65, %c0_66, %c0_67] : memref<3x3x6x4x4xf32, #tpu.memory_space<vmem>>, vector<1x1x4x4x4xf32>
    %61 = vector.shape_cast %60 : vector<1x1x4x4x4xf32> to vector<4x4x4xf32>
    %62 = vector.shape_cast %54 : vector<4x4x4xf32> to vector<1x1x4x4x4xf32>
    tpu.vector_store %arg9[%c1_63, %c1_64, %c1_65, %c0_66, %c0_67], %62 {strides = array<i32>} : memref<3x3x6x4x4xf32, #tpu.memory_space<vmem>>, vector<1x1x4x4x4xf32>,
    %63 = vector.extract_strided_slice %54 {offsets = [0, 1, 0], sizes = [4, 3, 4], strides = [1, 1, 1]} : vector<4x4x4xf32> to vector<4x3x4xf32>
    %64 = tpu.concatenate %63, %19 in 1 : vector<4x3x4xf32>, vector<4x1x4xf32> -> vector<4x4x4xf32>
    %c1_68 = arith.constant 1 : index
    %c2_69 = arith.constant 2 : index
    %c1_70 = arith.constant 1 : index
    %c0_71 = arith.constant 0 : index
    %c0_72 = arith.constant 0 : index
    %65 = vector.load %arg9[%c1_68, %c2_69, %c1_70, %c0_71, %c0_72] : memref<3x3x6x4x4xf32, #tpu.memory_space<vmem>>, vector<1x1x4x4x4xf32>
    %66 = vector.shape_cast %65 : vector<1x1x4x4x4xf32> to vector<4x4x4xf32>
    %67 = vector.shape_cast %64 : vector<4x4x4xf32> to vector<1x1x4x4x4xf32>
    tpu.vector_store %arg9[%c1_68, %c2_69, %c1_70, %c0_71, %c0_72], %67 {strides = array<i32>} : memref<3x3x6x4x4xf32, #tpu.memory_space<vmem>>, vector<1x1x4x4x4xf32>,
    %c1_73 = arith.constant 1 : index
    %c0_74 = arith.constant 0 : index
    %c0_75 = arith.constant 0 : index
    %c0_76 = arith.constant 0 : index
    %c0_77 = arith.constant 0 : index
    %68 = vector.load %arg9[%c1_73, %c0_74, %c0_75, %c0_76, %c0_77] : memref<3x3x6x4x4xf32, #tpu.memory_space<vmem>>, vector<1x1x1x4x4xf32>
    %69 = vector.shape_cast %68 : vector<1x1x1x4x4xf32> to vector<4x4xf32>
    %70 = vector.shape_cast %18 : vector<4x4xf32> to vector<1x1x1x4x4xf32>
    tpu.vector_store %arg9[%c1_73, %c0_74, %c0_75, %c0_76, %c0_77], %70 {strides = array<i32>} : memref<3x3x6x4x4xf32, #tpu.memory_space<vmem>>, vector<1x1x1x4x4xf32>,
    %c1_78 = arith.constant 1 : index
    %c0_79 = arith.constant 0 : index
    %c5_80 = arith.constant 5 : index
    %c0_81 = arith.constant 0 : index
    %c0_82 = arith.constant 0 : index
    %71 = vector.load %arg9[%c1_78, %c0_79, %c5_80, %c0_81, %c0_82] : memref<3x3x6x4x4xf32, #tpu.memory_space<vmem>>, vector<1x1x1x4x4xf32>
    %72 = vector.shape_cast %71 : vector<1x1x1x4x4xf32> to vector<4x4xf32>
    %73 = vector.shape_cast %18 : vector<4x4xf32> to vector<1x1x1x4x4xf32>
    tpu.vector_store %arg9[%c1_78, %c0_79, %c5_80, %c0_81, %c0_82], %73 {strides = array<i32>} : memref<3x3x6x4x4xf32, #tpu.memory_space<vmem>>, vector<1x1x1x4x4xf32>,
    %c1_83 = arith.constant 1 : index
    %c1_84 = arith.constant 1 : index
    %c0_85 = arith.constant 0 : index
    %c0_86 = arith.constant 0 : index
    %c0_87 = arith.constant 0 : index
    %74 = vector.load %arg9[%c1_83, %c1_84, %c0_85, %c0_86, %c0_87] : memref<3x3x6x4x4xf32, #tpu.memory_space<vmem>>, vector<1x1x1x4x4xf32>
    %75 = vector.shape_cast %74 : vector<1x1x1x4x4xf32> to vector<4x4xf32>
    %76 = vector.shape_cast %18 : vector<4x4xf32> to vector<1x1x1x4x4xf32>
    tpu.vector_store %arg9[%c1_83, %c1_84, %c0_85, %c0_86, %c0_87], %76 {strides = array<i32>} : memref<3x3x6x4x4xf32, #tpu.memory_space<vmem>>, vector<1x1x1x4x4xf32>,
    %c1_88 = arith.constant 1 : index
    %c1_89 = arith.constant 1 : index
    %c5_90 = arith.constant 5 : index
    %c0_91 = arith.constant 0 : index
    %c0_92 = arith.constant 0 : index
    %77 = vector.load %arg9[%c1_88, %c1_89, %c5_90, %c0_91, %c0_92] : memref<3x3x6x4x4xf32, #tpu.memory_space<vmem>>, vector<1x1x1x4x4xf32>
    %78 = vector.shape_cast %77 : vector<1x1x1x4x4xf32> to vector<4x4xf32>
    %79 = vector.shape_cast %18 : vector<4x4xf32> to vector<1x1x1x4x4xf32>
    tpu.vector_store %arg9[%c1_88, %c1_89, %c5_90, %c0_91, %c0_92], %79 {strides = array<i32>} : memref<3x3x6x4x4xf32, #tpu.memory_space<vmem>>, vector<1x1x1x4x4xf32>,
    %c1_93 = arith.constant 1 : index
    %c2_94 = arith.constant 2 : index
    %c0_95 = arith.constant 0 : index
    %c0_96 = arith.constant 0 : index
    %c0_97 = arith.constant 0 : index
    %80 = vector.load %arg9[%c1_93, %c2_94, %c0_95, %c0_96, %c0_97] : memref<3x3x6x4x4xf32, #tpu.memory_space<vmem>>, vector<1x1x1x4x4xf32>
    %81 = vector.shape_cast %80 : vector<1x1x1x4x4xf32> to vector<4x4xf32>
    %82 = vector.shape_cast %18 : vector<4x4xf32> to vector<1x1x1x4x4xf32>
    tpu.vector_store %arg9[%c1_93, %c2_94, %c0_95, %c0_96, %c0_97], %82 {strides = array<i32>} : memref<3x3x6x4x4xf32, #tpu.memory_space<vmem>>, vector<1x1x1x4x4xf32>,
    %c1_98 = arith.constant 1 : index
    %c2_99 = arith.constant 2 : index
    %c5_100 = arith.constant 5 : index
    %c0_101 = arith.constant 0 : index
    %c0_102 = arith.constant 0 : index
    %83 = vector.load %arg9[%c1_98, %c2_99, %c5_100, %c0_101, %c0_102] : memref<3x3x6x4x4xf32, #tpu.memory_space<vmem>>, vector<1x1x1x4x4xf32>
    %84 = vector.shape_cast %83 : vector<1x1x1x4x4xf32> to vector<4x4xf32>
    %85 = vector.shape_cast %18 : vector<4x4xf32> to vector<1x1x1x4x4xf32>
    tpu.vector_store %arg9[%c1_98, %c2_99, %c5_100, %c0_101, %c0_102], %85 {strides = array<i32>} : memref<3x3x6x4x4xf32, #tpu.memory_space<vmem>>, vector<1x1x1x4x4xf32>,
    %c0_103 = arith.constant 0 : index
    %c0_104 = arith.constant 0 : index
    %c0_105 = arith.constant 0 : index
    %c0_106 = arith.constant 0 : index
    %c0_107 = arith.constant 0 : index
    %86 = vector.load %arg5[%c0_103, %c0_104, %c0_105, %c0_106, %c0_107] : memref<1x1x4x4x4xf32, #tpu.memory_space<vmem>>, vector<1x1x4x4x4xf32>
    %87 = vector.shape_cast %86 : vector<1x1x4x4x4xf32> to vector<4x4x4xf32>
    %88 = vector.extract_strided_slice %87 {offsets = [0, 0, 0], sizes = [4, 3, 4], strides = [1, 1, 1]} : vector<4x4x4xf32> to vector<4x3x4xf32>
    %89 = tpu.concatenate %19, %88 in 1 : vector<4x1x4xf32>, vector<4x3x4xf32> -> vector<4x4x4xf32>
    %c2_108 = arith.constant 2 : index
    %c0_109 = arith.constant 0 : index
    %c1_110 = arith.constant 1 : index
    %c0_111 = arith.constant 0 : index
    %c0_112 = arith.constant 0 : index
    %90 = vector.load %arg9[%c2_108, %c0_109, %c1_110, %c0_111, %c0_112] : memref<3x3x6x4x4xf32, #tpu.memory_space<vmem>>, vector<1x1x4x4x4xf32>
    %91 = vector.shape_cast %90 : vector<1x1x4x4x4xf32> to vector<4x4x4xf32>
    %92 = vector.shape_cast %89 : vector<4x4x4xf32> to vector<1x1x4x4x4xf32>
    tpu.vector_store %arg9[%c2_108, %c0_109, %c1_110, %c0_111, %c0_112], %92 {strides = array<i32>} : memref<3x3x6x4x4xf32, #tpu.memory_space<vmem>>, vector<1x1x4x4x4xf32>,
    %c2_113 = arith.constant 2 : index
    %c1_114 = arith.constant 1 : index
    %c1_115 = arith.constant 1 : index
    %c0_116 = arith.constant 0 : index
    %c0_117 = arith.constant 0 : index
    %93 = vector.load %arg9[%c2_113, %c1_114, %c1_115, %c0_116, %c0_117] : memref<3x3x6x4x4xf32, #tpu.memory_space<vmem>>, vector<1x1x4x4x4xf32>
    %94 = vector.shape_cast %93 : vector<1x1x4x4x4xf32> to vector<4x4x4xf32>
    %95 = vector.shape_cast %87 : vector<4x4x4xf32> to vector<1x1x4x4x4xf32>
    tpu.vector_store %arg9[%c2_113, %c1_114, %c1_115, %c0_116, %c0_117], %95 {strides = array<i32>} : memref<3x3x6x4x4xf32, #tpu.memory_space<vmem>>, vector<1x1x4x4x4xf32>,
    %96 = vector.extract_strided_slice %87 {offsets = [0, 1, 0], sizes = [4, 3, 4], strides = [1, 1, 1]} : vector<4x4x4xf32> to vector<4x3x4xf32>
    %97 = tpu.concatenate %96, %19 in 1 : vector<4x3x4xf32>, vector<4x1x4xf32> -> vector<4x4x4xf32>
    %c2_118 = arith.constant 2 : index
    %c2_119 = arith.constant 2 : index
    %c1_120 = arith.constant 1 : index
    %c0_121 = arith.constant 0 : index
    %c0_122 = arith.constant 0 : index
    %98 = vector.load %arg9[%c2_118, %c2_119, %c1_120, %c0_121, %c0_122] : memref<3x3x6x4x4xf32, #tpu.memory_space<vmem>>, vector<1x1x4x4x4xf32>
    %99 = vector.shape_cast %98 : vector<1x1x4x4x4xf32> to vector<4x4x4xf32>
    %100 = vector.shape_cast %97 : vector<4x4x4xf32> to vector<1x1x4x4x4xf32>
    tpu.vector_store %arg9[%c2_118, %c2_119, %c1_120, %c0_121, %c0_122], %100 {strides = array<i32>} : memref<3x3x6x4x4xf32, #tpu.memory_space<vmem>>, vector<1x1x4x4x4xf32>,
    %c2_123 = arith.constant 2 : index
    %c0_124 = arith.constant 0 : index
    %c0_125 = arith.constant 0 : index
    %c0_126 = arith.constant 0 : index
    %c0_127 = arith.constant 0 : index
    %101 = vector.load %arg9[%c2_123, %c0_124, %c0_125, %c0_126, %c0_127] : memref<3x3x6x4x4xf32, #tpu.memory_space<vmem>>, vector<1x1x1x4x4xf32>
    %102 = vector.shape_cast %101 : vector<1x1x1x4x4xf32> to vector<4x4xf32>
    %103 = vector.shape_cast %18 : vector<4x4xf32> to vector<1x1x1x4x4xf32>
    tpu.vector_store %arg9[%c2_123, %c0_124, %c0_125, %c0_126, %c0_127], %103 {strides = array<i32>} : memref<3x3x6x4x4xf32, #tpu.memory_space<vmem>>, vector<1x1x1x4x4xf32>,
    %c2_128 = arith.constant 2 : index
    %c0_129 = arith.constant 0 : index
    %c5_130 = arith.constant 5 : index
    %c0_131 = arith.constant 0 : index
    %c0_132 = arith.constant 0 : index
    %104 = vector.load %arg9[%c2_128, %c0_129, %c5_130, %c0_131, %c0_132] : memref<3x3x6x4x4xf32, #tpu.memory_space<vmem>>, vector<1x1x1x4x4xf32>
    %105 = vector.shape_cast %104 : vector<1x1x1x4x4xf32> to vector<4x4xf32>
    %106 = vector.shape_cast %18 : vector<4x4xf32> to vector<1x1x1x4x4xf32>
    tpu.vector_store %arg9[%c2_128, %c0_129, %c5_130, %c0_131, %c0_132], %106 {strides = array<i32>} : memref<3x3x6x4x4xf32, #tpu.memory_space<vmem>>, vector<1x1x1x4x4xf32>,
    %c2_133 = arith.constant 2 : index
    %c1_134 = arith.constant 1 : index
    %c0_135 = arith.constant 0 : index
    %c0_136 = arith.constant 0 : index
    %c0_137 = arith.constant 0 : index
    %107 = vector.load %arg9[%c2_133, %c1_134, %c0_135, %c0_136, %c0_137] : memref<3x3x6x4x4xf32, #tpu.memory_space<vmem>>, vector<1x1x1x4x4xf32>
    %108 = vector.shape_cast %107 : vector<1x1x1x4x4xf32> to vector<4x4xf32>
    %109 = vector.shape_cast %18 : vector<4x4xf32> to vector<1x1x1x4x4xf32>
    tpu.vector_store %arg9[%c2_133, %c1_134, %c0_135, %c0_136, %c0_137], %109 {strides = array<i32>} : memref<3x3x6x4x4xf32, #tpu.memory_space<vmem>>, vector<1x1x1x4x4xf32>,
    %c2_138 = arith.constant 2 : index
    %c1_139 = arith.constant 1 : index
    %c5_140 = arith.constant 5 : index
    %c0_141 = arith.constant 0 : index
    %c0_142 = arith.constant 0 : index
    %110 = vector.load %arg9[%c2_138, %c1_139, %c5_140, %c0_141, %c0_142] : memref<3x3x6x4x4xf32, #tpu.memory_space<vmem>>, vector<1x1x1x4x4xf32>
    %111 = vector.shape_cast %110 : vector<1x1x1x4x4xf32> to vector<4x4xf32>
    %112 = vector.shape_cast %18 : vector<4x4xf32> to vector<1x1x1x4x4xf32>
    tpu.vector_store %arg9[%c2_138, %c1_139, %c5_140, %c0_141, %c0_142], %112 {strides = array<i32>} : memref<3x3x6x4x4xf32, #tpu.memory_space<vmem>>, vector<1x1x1x4x4xf32>,
    %c2_143 = arith.constant 2 : index
    %c2_144 = arith.constant 2 : index
    %c0_145 = arith.constant 0 : index
    %c0_146 = arith.constant 0 : index
    %c0_147 = arith.constant 0 : index
    %113 = vector.load %arg9[%c2_143, %c2_144, %c0_145, %c0_146, %c0_147] : memref<3x3x6x4x4xf32, #tpu.memory_space<vmem>>, vector<1x1x1x4x4xf32>
    %114 = vector.shape_cast %113 : vector<1x1x1x4x4xf32> to vector<4x4xf32>
    %115 = vector.shape_cast %18 : vector<4x4xf32> to vector<1x1x1x4x4xf32>
    tpu.vector_store %arg9[%c2_143, %c2_144, %c0_145, %c0_146, %c0_147], %115 {strides = array<i32>} : memref<3x3x6x4x4xf32, #tpu.memory_space<vmem>>, vector<1x1x1x4x4xf32>,
    %c2_148 = arith.constant 2 : index
    %c2_149 = arith.constant 2 : index
    %c5_150 = arith.constant 5 : index
    %c0_151 = arith.constant 0 : index
    %c0_152 = arith.constant 0 : index
    %116 = vector.load %arg9[%c2_148, %c2_149, %c5_150, %c0_151, %c0_152] : memref<3x3x6x4x4xf32, #tpu.memory_space<vmem>>, vector<1x1x1x4x4xf32>
    %117 = vector.shape_cast %116 : vector<1x1x1x4x4xf32> to vector<4x4xf32>
    %118 = vector.shape_cast %18 : vector<4x4xf32> to vector<1x1x1x4x4xf32>
    tpu.vector_store %arg9[%c2_148, %c2_149, %c5_150, %c0_151, %c0_152], %118 {strides = array<i32>} : memref<3x3x6x4x4xf32, #tpu.memory_space<vmem>>, vector<1x1x1x4x4xf32>,
    %c0_i32_153 = arith.constant 0 : i32
    %c4_i32 = arith.constant 4 : i32
    %119 = arith.addi %c0_i32_153, %c4_i32 : i32
    %c1_i32 = arith.constant 1 : i32
    scf.for %arg10 = %c0_i32_153 to %119 step %c1_i32  : i32 {
      %cst_155 = arith.constant 0.000000e+00 : f32
      %120 = vector.broadcast %cst_155 : f32 to vector<4x4xf32>
      %121 = vector.extract_strided_slice %10 {offsets = [0, 0, 0], sizes = [1, 3, 4], strides = [1, 1, 1]} : vector<3x3x4xf32> to vector<1x3x4xf32>
      %122 = vector.shape_cast %121 : vector<1x3x4xf32> to vector<3x4xf32>
      %c0_i32_156 = arith.constant 0 : i32
      %123 = arith.addi %arg10, %c0_i32_156 : i32
      %c0_157 = arith.constant 0 : index
      %c0_158 = arith.constant 0 : index
      %124 = arith.index_cast %123 : i32 to index
      %c0_159 = arith.constant 0 : index
      %c0_160 = arith.constant 0 : index
      %125 = vector.load %arg9[%c0_157, %c0_158, %124, %c0_159, %c0_160] : memref<3x3x6x4x4xf32, #tpu.memory_space<vmem>>, vector<1x1x1x4x4xf32>
      %126 = vector.shape_cast %125 : vector<1x1x1x4x4xf32> to vector<4x4xf32>
      %127 = vector.extract_strided_slice %122 {offsets = [0, 0], sizes = [1, 4], strides = [1, 1]} : vector<3x4xf32> to vector<1x4xf32>
      %128 = vector.broadcast %127 : vector<1x4xf32> to vector<4x4xf32>
      %129 = arith.mulf %126, %128 : vector<4x4xf32>
      %130 = arith.addf %120, %129 : vector<4x4xf32>
      %c0_i32_161 = arith.constant 0 : i32
      %131 = arith.addi %arg10, %c0_i32_161 : i32
      %c0_162 = arith.constant 0 : index
      %c1_163 = arith.constant 1 : index
      %132 = arith.index_cast %131 : i32 to index
      %c0_164 = arith.constant 0 : index
      %c0_165 = arith.constant 0 : index
      %133 = vector.load %arg9[%c0_162, %c1_163, %132, %c0_164, %c0_165] : memref<3x3x6x4x4xf32, #tpu.memory_space<vmem>>, vector<1x1x1x4x4xf32>
      %134 = vector.shape_cast %133 : vector<1x1x1x4x4xf32> to vector<4x4xf32>
      %135 = vector.extract_strided_slice %122 {offsets = [1, 0], sizes = [1, 4], strides = [1, 1]} : vector<3x4xf32> to vector<1x4xf32>
      %136 = vector.broadcast %135 : vector<1x4xf32> to vector<4x4xf32>
      %137 = arith.mulf %134, %136 : vector<4x4xf32>
      %138 = arith.addf %130, %137 : vector<4x4xf32>
      %c0_i32_166 = arith.constant 0 : i32
      %139 = arith.addi %arg10, %c0_i32_166 : i32
      %c0_167 = arith.constant 0 : index
      %c2_168 = arith.constant 2 : index
      %140 = arith.index_cast %139 : i32 to index
      %c0_169 = arith.constant 0 : index
      %c0_170 = arith.constant 0 : index
      %141 = vector.load %arg9[%c0_167, %c2_168, %140, %c0_169, %c0_170] : memref<3x3x6x4x4xf32, #tpu.memory_space<vmem>>, vector<1x1x1x4x4xf32>
      %142 = vector.shape_cast %141 : vector<1x1x1x4x4xf32> to vector<4x4xf32>
      %143 = vector.extract_strided_slice %122 {offsets = [2, 0], sizes = [1, 4], strides = [1, 1]} : vector<3x4xf32> to vector<1x4xf32>
      %144 = vector.broadcast %143 : vector<1x4xf32> to vector<4x4xf32>
      %145 = arith.mulf %142, %144 : vector<4x4xf32>
      %146 = arith.addf %138, %145 : vector<4x4xf32>
      %147 = vector.extract_strided_slice %10 {offsets = [1, 0, 0], sizes = [1, 3, 4], strides = [1, 1, 1]} : vector<3x3x4xf32> to vector<1x3x4xf32>
      %148 = vector.shape_cast %147 : vector<1x3x4xf32> to vector<3x4xf32>
      %c1_i32_171 = arith.constant 1 : i32
      %149 = arith.addi %arg10, %c1_i32_171 : i32
      %c0_172 = arith.constant 0 : index
      %c0_173 = arith.constant 0 : index
      %150 = arith.index_cast %149 : i32 to index
      %c0_174 = arith.constant 0 : index
      %c0_175 = arith.constant 0 : index
      %151 = vector.load %arg9[%c0_172, %c0_173, %150, %c0_174, %c0_175] : memref<3x3x6x4x4xf32, #tpu.memory_space<vmem>>, vector<1x1x1x4x4xf32>
      %152 = vector.shape_cast %151 : vector<1x1x1x4x4xf32> to vector<4x4xf32>
      %153 = vector.extract_strided_slice %148 {offsets = [0, 0], sizes = [1, 4], strides = [1, 1]} : vector<3x4xf32> to vector<1x4xf32>
      %154 = vector.broadcast %153 : vector<1x4xf32> to vector<4x4xf32>
      %155 = arith.mulf %152, %154 : vector<4x4xf32>
      %156 = arith.addf %146, %155 : vector<4x4xf32>
      %c1_i32_176 = arith.constant 1 : i32
      %157 = arith.addi %arg10, %c1_i32_176 : i32
      %c0_177 = arith.constant 0 : index
      %c1_178 = arith.constant 1 : index
      %158 = arith.index_cast %157 : i32 to index
      %c0_179 = arith.constant 0 : index
      %c0_180 = arith.constant 0 : index
      %159 = vector.load %arg9[%c0_177, %c1_178, %158, %c0_179, %c0_180] : memref<3x3x6x4x4xf32, #tpu.memory_space<vmem>>, vector<1x1x1x4x4xf32>
      %160 = vector.shape_cast %159 : vector<1x1x1x4x4xf32> to vector<4x4xf32>
      %161 = vector.extract_strided_slice %148 {offsets = [1, 0], sizes = [1, 4], strides = [1, 1]} : vector<3x4xf32> to vector<1x4xf32>
      %162 = vector.broadcast %161 : vector<1x4xf32> to vector<4x4xf32>
      %163 = arith.mulf %160, %162 : vector<4x4xf32>
      %164 = arith.addf %156, %163 : vector<4x4xf32>
      %c1_i32_181 = arith.constant 1 : i32
      %165 = arith.addi %arg10, %c1_i32_181 : i32
      %c0_182 = arith.constant 0 : index
      %c2_183 = arith.constant 2 : index
      %166 = arith.index_cast %165 : i32 to index
      %c0_184 = arith.constant 0 : index
      %c0_185 = arith.constant 0 : index
      %167 = vector.load %arg9[%c0_182, %c2_183, %166, %c0_184, %c0_185] : memref<3x3x6x4x4xf32, #tpu.memory_space<vmem>>, vector<1x1x1x4x4xf32>
      %168 = vector.shape_cast %167 : vector<1x1x1x4x4xf32> to vector<4x4xf32>
      %169 = vector.extract_strided_slice %148 {offsets = [2, 0], sizes = [1, 4], strides = [1, 1]} : vector<3x4xf32> to vector<1x4xf32>
      %170 = vector.broadcast %169 : vector<1x4xf32> to vector<4x4xf32>
      %171 = arith.mulf %168, %170 : vector<4x4xf32>
      %172 = arith.addf %164, %171 : vector<4x4xf32>
      %173 = vector.extract_strided_slice %10 {offsets = [2, 0, 0], sizes = [1, 3, 4], strides = [1, 1, 1]} : vector<3x3x4xf32> to vector<1x3x4xf32>
      %174 = vector.shape_cast %173 : vector<1x3x4xf32> to vector<3x4xf32>
      %c2_i32 = arith.constant 2 : i32
      %175 = arith.addi %arg10, %c2_i32 : i32
      %c0_186 = arith.constant 0 : index
      %c0_187 = arith.constant 0 : index
      %176 = arith.index_cast %175 : i32 to index
      %c0_188 = arith.constant 0 : index
      %c0_189 = arith.constant 0 : index
      %177 = vector.load %arg9[%c0_186, %c0_187, %176, %c0_188, %c0_189] : memref<3x3x6x4x4xf32, #tpu.memory_space<vmem>>, vector<1x1x1x4x4xf32>
      %178 = vector.shape_cast %177 : vector<1x1x1x4x4xf32> to vector<4x4xf32>
      %179 = vector.extract_strided_slice %174 {offsets = [0, 0], sizes = [1, 4], strides = [1, 1]} : vector<3x4xf32> to vector<1x4xf32>
      %180 = vector.broadcast %179 : vector<1x4xf32> to vector<4x4xf32>
      %181 = arith.mulf %178, %180 : vector<4x4xf32>
      %182 = arith.addf %172, %181 : vector<4x4xf32>
      %c2_i32_190 = arith.constant 2 : i32
      %183 = arith.addi %arg10, %c2_i32_190 : i32
      %c0_191 = arith.constant 0 : index
      %c1_192 = arith.constant 1 : index
      %184 = arith.index_cast %183 : i32 to index
      %c0_193 = arith.constant 0 : index
      %c0_194 = arith.constant 0 : index
      %185 = vector.load %arg9[%c0_191, %c1_192, %184, %c0_193, %c0_194] : memref<3x3x6x4x4xf32, #tpu.memory_space<vmem>>, vector<1x1x1x4x4xf32>
      %186 = vector.shape_cast %185 : vector<1x1x1x4x4xf32> to vector<4x4xf32>
      %187 = vector.extract_strided_slice %174 {offsets = [1, 0], sizes = [1, 4], strides = [1, 1]} : vector<3x4xf32> to vector<1x4xf32>
      %188 = vector.broadcast %187 : vector<1x4xf32> to vector<4x4xf32>
      %189 = arith.mulf %186, %188 : vector<4x4xf32>
      %190 = arith.addf %182, %189 : vector<4x4xf32>
      %c2_i32_195 = arith.constant 2 : i32
      %191 = arith.addi %arg10, %c2_i32_195 : i32
      %c0_196 = arith.constant 0 : index
      %c2_197 = arith.constant 2 : index
      %192 = arith.index_cast %191 : i32 to index
      %c0_198 = arith.constant 0 : index
      %c0_199 = arith.constant 0 : index
      %193 = vector.load %arg9[%c0_196, %c2_197, %192, %c0_198, %c0_199] : memref<3x3x6x4x4xf32, #tpu.memory_space<vmem>>, vector<1x1x1x4x4xf32>
      %194 = vector.shape_cast %193 : vector<1x1x1x4x4xf32> to vector<4x4xf32>
      %195 = vector.extract_strided_slice %174 {offsets = [2, 0], sizes = [1, 4], strides = [1, 1]} : vector<3x4xf32> to vector<1x4xf32>
      %196 = vector.broadcast %195 : vector<1x4xf32> to vector<4x4xf32>
      %197 = arith.mulf %194, %196 : vector<4x4xf32>
      %198 = arith.addf %190, %197 : vector<4x4xf32>
      %199 = vector.extract_strided_slice %12 {offsets = [0, 0, 0], sizes = [1, 3, 4], strides = [1, 1, 1]} : vector<3x3x4xf32> to vector<1x3x4xf32>
      %200 = vector.shape_cast %199 : vector<1x3x4xf32> to vector<3x4xf32>
      %c0_i32_200 = arith.constant 0 : i32
      %201 = arith.addi %arg10, %c0_i32_200 : i32
      %c1_201 = arith.constant 1 : index
      %c0_202 = arith.constant 0 : index
      %202 = arith.index_cast %201 : i32 to index
      %c0_203 = arith.constant 0 : index
      %c0_204 = arith.constant 0 : index
      %203 = vector.load %arg9[%c1_201, %c0_202, %202, %c0_203, %c0_204] : memref<3x3x6x4x4xf32, #tpu.memory_space<vmem>>, vector<1x1x1x4x4xf32>
      %204 = vector.shape_cast %203 : vector<1x1x1x4x4xf32> to vector<4x4xf32>
      %205 = vector.extract_strided_slice %200 {offsets = [0, 0], sizes = [1, 4], strides = [1, 1]} : vector<3x4xf32> to vector<1x4xf32>
      %206 = vector.broadcast %205 : vector<1x4xf32> to vector<4x4xf32>
      %207 = arith.mulf %204, %206 : vector<4x4xf32>
      %208 = arith.addf %198, %207 : vector<4x4xf32>
      %c0_i32_205 = arith.constant 0 : i32
      %209 = arith.addi %arg10, %c0_i32_205 : i32
      %c1_206 = arith.constant 1 : index
      %c1_207 = arith.constant 1 : index
      %210 = arith.index_cast %209 : i32 to index
      %c0_208 = arith.constant 0 : index
      %c0_209 = arith.constant 0 : index
      %211 = vector.load %arg9[%c1_206, %c1_207, %210, %c0_208, %c0_209] : memref<3x3x6x4x4xf32, #tpu.memory_space<vmem>>, vector<1x1x1x4x4xf32>
      %212 = vector.shape_cast %211 : vector<1x1x1x4x4xf32> to vector<4x4xf32>
      %213 = vector.extract_strided_slice %200 {offsets = [1, 0], sizes = [1, 4], strides = [1, 1]} : vector<3x4xf32> to vector<1x4xf32>
      %214 = vector.broadcast %213 : vector<1x4xf32> to vector<4x4xf32>
      %215 = arith.mulf %212, %214 : vector<4x4xf32>
      %216 = arith.addf %208, %215 : vector<4x4xf32>
      %c0_i32_210 = arith.constant 0 : i32
      %217 = arith.addi %arg10, %c0_i32_210 : i32
      %c1_211 = arith.constant 1 : index
      %c2_212 = arith.constant 2 : index
      %218 = arith.index_cast %217 : i32 to index
      %c0_213 = arith.constant 0 : index
      %c0_214 = arith.constant 0 : index
      %219 = vector.load %arg9[%c1_211, %c2_212, %218, %c0_213, %c0_214] : memref<3x3x6x4x4xf32, #tpu.memory_space<vmem>>, vector<1x1x1x4x4xf32>
      %220 = vector.shape_cast %219 : vector<1x1x1x4x4xf32> to vector<4x4xf32>
      %221 = vector.extract_strided_slice %200 {offsets = [2, 0], sizes = [1, 4], strides = [1, 1]} : vector<3x4xf32> to vector<1x4xf32>
      %222 = vector.broadcast %221 : vector<1x4xf32> to vector<4x4xf32>
      %223 = arith.mulf %220, %222 : vector<4x4xf32>
      %224 = arith.addf %216, %223 : vector<4x4xf32>
      %225 = vector.extract_strided_slice %12 {offsets = [1, 0, 0], sizes = [1, 3, 4], strides = [1, 1, 1]} : vector<3x3x4xf32> to vector<1x3x4xf32>
      %226 = vector.shape_cast %225 : vector<1x3x4xf32> to vector<3x4xf32>
      %c1_i32_215 = arith.constant 1 : i32
      %227 = arith.addi %arg10, %c1_i32_215 : i32
      %c1_216 = arith.constant 1 : index
      %c0_217 = arith.constant 0 : index
      %228 = arith.index_cast %227 : i32 to index
      %c0_218 = arith.constant 0 : index
      %c0_219 = arith.constant 0 : index
      %229 = vector.load %arg9[%c1_216, %c0_217, %228, %c0_218, %c0_219] : memref<3x3x6x4x4xf32, #tpu.memory_space<vmem>>, vector<1x1x1x4x4xf32>
      %230 = vector.shape_cast %229 : vector<1x1x1x4x4xf32> to vector<4x4xf32>
      %231 = vector.extract_strided_slice %226 {offsets = [0, 0], sizes = [1, 4], strides = [1, 1]} : vector<3x4xf32> to vector<1x4xf32>
      %232 = vector.broadcast %231 : vector<1x4xf32> to vector<4x4xf32>
      %233 = arith.mulf %230, %232 : vector<4x4xf32>
      %234 = arith.addf %224, %233 : vector<4x4xf32>
      %c1_i32_220 = arith.constant 1 : i32
      %235 = arith.addi %arg10, %c1_i32_220 : i32
      %c1_221 = arith.constant 1 : index
      %c1_222 = arith.constant 1 : index
      %236 = arith.index_cast %235 : i32 to index
      %c0_223 = arith.constant 0 : index
      %c0_224 = arith.constant 0 : index
      %237 = vector.load %arg9[%c1_221, %c1_222, %236, %c0_223, %c0_224] : memref<3x3x6x4x4xf32, #tpu.memory_space<vmem>>, vector<1x1x1x4x4xf32>
      %238 = vector.shape_cast %237 : vector<1x1x1x4x4xf32> to vector<4x4xf32>
      %239 = vector.extract_strided_slice %226 {offsets = [1, 0], sizes = [1, 4], strides = [1, 1]} : vector<3x4xf32> to vector<1x4xf32>
      %240 = vector.broadcast %239 : vector<1x4xf32> to vector<4x4xf32>
      %241 = arith.mulf %238, %240 : vector<4x4xf32>
      %242 = arith.addf %234, %241 : vector<4x4xf32>
      %c1_i32_225 = arith.constant 1 : i32
      %243 = arith.addi %arg10, %c1_i32_225 : i32
      %c1_226 = arith.constant 1 : index
      %c2_227 = arith.constant 2 : index
      %244 = arith.index_cast %243 : i32 to index
      %c0_228 = arith.constant 0 : index
      %c0_229 = arith.constant 0 : index
      %245 = vector.load %arg9[%c1_226, %c2_227, %244, %c0_228, %c0_229] : memref<3x3x6x4x4xf32, #tpu.memory_space<vmem>>, vector<1x1x1x4x4xf32>
      %246 = vector.shape_cast %245 : vector<1x1x1x4x4xf32> to vector<4x4xf32>
      %247 = vector.extract_strided_slice %226 {offsets = [2, 0], sizes = [1, 4], strides = [1, 1]} : vector<3x4xf32> to vector<1x4xf32>
      %248 = vector.broadcast %247 : vector<1x4xf32> to vector<4x4xf32>
      %249 = arith.mulf %246, %248 : vector<4x4xf32>
      %250 = arith.addf %242, %249 : vector<4x4xf32>
      %251 = vector.extract_strided_slice %12 {offsets = [2, 0, 0], sizes = [1, 3, 4], strides = [1, 1, 1]} : vector<3x3x4xf32> to vector<1x3x4xf32>
      %252 = vector.shape_cast %251 : vector<1x3x4xf32> to vector<3x4xf32>
      %c2_i32_230 = arith.constant 2 : i32
      %253 = arith.addi %arg10, %c2_i32_230 : i32
      %c1_231 = arith.constant 1 : index
      %c0_232 = arith.constant 0 : index
      %254 = arith.index_cast %253 : i32 to index
      %c0_233 = arith.constant 0 : index
      %c0_234 = arith.constant 0 : index
      %255 = vector.load %arg9[%c1_231, %c0_232, %254, %c0_233, %c0_234] : memref<3x3x6x4x4xf32, #tpu.memory_space<vmem>>, vector<1x1x1x4x4xf32>
      %256 = vector.shape_cast %255 : vector<1x1x1x4x4xf32> to vector<4x4xf32>
      %257 = vector.extract_strided_slice %252 {offsets = [0, 0], sizes = [1, 4], strides = [1, 1]} : vector<3x4xf32> to vector<1x4xf32>
      %258 = vector.broadcast %257 : vector<1x4xf32> to vector<4x4xf32>
      %259 = arith.mulf %256, %258 : vector<4x4xf32>
      %260 = arith.addf %250, %259 : vector<4x4xf32>
      %c2_i32_235 = arith.constant 2 : i32
      %261 = arith.addi %arg10, %c2_i32_235 : i32
      %c1_236 = arith.constant 1 : index
      %c1_237 = arith.constant 1 : index
      %262 = arith.index_cast %261 : i32 to index
      %c0_238 = arith.constant 0 : index
      %c0_239 = arith.constant 0 : index
      %263 = vector.load %arg9[%c1_236, %c1_237, %262, %c0_238, %c0_239] : memref<3x3x6x4x4xf32, #tpu.memory_space<vmem>>, vector<1x1x1x4x4xf32>
      %264 = vector.shape_cast %263 : vector<1x1x1x4x4xf32> to vector<4x4xf32>
      %265 = vector.extract_strided_slice %252 {offsets = [1, 0], sizes = [1, 4], strides = [1, 1]} : vector<3x4xf32> to vector<1x4xf32>
      %266 = vector.broadcast %265 : vector<1x4xf32> to vector<4x4xf32>
      %267 = arith.mulf %264, %266 : vector<4x4xf32>
      %268 = arith.addf %260, %267 : vector<4x4xf32>
      %c2_i32_240 = arith.constant 2 : i32
      %269 = arith.addi %arg10, %c2_i32_240 : i32
      %c1_241 = arith.constant 1 : index
      %c2_242 = arith.constant 2 : index
      %270 = arith.index_cast %269 : i32 to index
      %c0_243 = arith.constant 0 : index
      %c0_244 = arith.constant 0 : index
      %271 = vector.load %arg9[%c1_241, %c2_242, %270, %c0_243, %c0_244] : memref<3x3x6x4x4xf32, #tpu.memory_space<vmem>>, vector<1x1x1x4x4xf32>
      %272 = vector.shape_cast %271 : vector<1x1x1x4x4xf32> to vector<4x4xf32>
      %273 = vector.extract_strided_slice %252 {offsets = [2, 0], sizes = [1, 4], strides = [1, 1]} : vector<3x4xf32> to vector<1x4xf32>
      %274 = vector.broadcast %273 : vector<1x4xf32> to vector<4x4xf32>
      %275 = arith.mulf %272, %274 : vector<4x4xf32>
      %276 = arith.addf %268, %275 : vector<4x4xf32>
      %277 = vector.extract_strided_slice %16 {offsets = [0, 0, 0], sizes = [1, 3, 4], strides = [1, 1, 1]} : vector<3x3x4xf32> to vector<1x3x4xf32>
      %278 = vector.shape_cast %277 : vector<1x3x4xf32> to vector<3x4xf32>
      %c0_i32_245 = arith.constant 0 : i32
      %279 = arith.addi %arg10, %c0_i32_245 : i32
      %c2_246 = arith.constant 2 : index
      %c0_247 = arith.constant 0 : index
      %280 = arith.index_cast %279 : i32 to index
      %c0_248 = arith.constant 0 : index
      %c0_249 = arith.constant 0 : index
      %281 = vector.load %arg9[%c2_246, %c0_247, %280, %c0_248, %c0_249] : memref<3x3x6x4x4xf32, #tpu.memory_space<vmem>>, vector<1x1x1x4x4xf32>
      %282 = vector.shape_cast %281 : vector<1x1x1x4x4xf32> to vector<4x4xf32>
      %283 = vector.extract_strided_slice %278 {offsets = [0, 0], sizes = [1, 4], strides = [1, 1]} : vector<3x4xf32> to vector<1x4xf32>
      %284 = vector.broadcast %283 : vector<1x4xf32> to vector<4x4xf32>
      %285 = arith.mulf %282, %284 : vector<4x4xf32>
      %286 = arith.addf %276, %285 : vector<4x4xf32>
      %c0_i32_250 = arith.constant 0 : i32
      %287 = arith.addi %arg10, %c0_i32_250 : i32
      %c2_251 = arith.constant 2 : index
      %c1_252 = arith.constant 1 : index
      %288 = arith.index_cast %287 : i32 to index
      %c0_253 = arith.constant 0 : index
      %c0_254 = arith.constant 0 : index
      %289 = vector.load %arg9[%c2_251, %c1_252, %288, %c0_253, %c0_254] : memref<3x3x6x4x4xf32, #tpu.memory_space<vmem>>, vector<1x1x1x4x4xf32>
      %290 = vector.shape_cast %289 : vector<1x1x1x4x4xf32> to vector<4x4xf32>
      %291 = vector.extract_strided_slice %278 {offsets = [1, 0], sizes = [1, 4], strides = [1, 1]} : vector<3x4xf32> to vector<1x4xf32>
      %292 = vector.broadcast %291 : vector<1x4xf32> to vector<4x4xf32>
      %293 = arith.mulf %290, %292 : vector<4x4xf32>
      %294 = arith.addf %286, %293 : vector<4x4xf32>
      %c0_i32_255 = arith.constant 0 : i32
      %295 = arith.addi %arg10, %c0_i32_255 : i32
      %c2_256 = arith.constant 2 : index
      %c2_257 = arith.constant 2 : index
      %296 = arith.index_cast %295 : i32 to index
      %c0_258 = arith.constant 0 : index
      %c0_259 = arith.constant 0 : index
      %297 = vector.load %arg9[%c2_256, %c2_257, %296, %c0_258, %c0_259] : memref<3x3x6x4x4xf32, #tpu.memory_space<vmem>>, vector<1x1x1x4x4xf32>
      %298 = vector.shape_cast %297 : vector<1x1x1x4x4xf32> to vector<4x4xf32>
      %299 = vector.extract_strided_slice %278 {offsets = [2, 0], sizes = [1, 4], strides = [1, 1]} : vector<3x4xf32> to vector<1x4xf32>
      %300 = vector.broadcast %299 : vector<1x4xf32> to vector<4x4xf32>
      %301 = arith.mulf %298, %300 : vector<4x4xf32>
      %302 = arith.addf %294, %301 : vector<4x4xf32>
      %303 = vector.extract_strided_slice %16 {offsets = [1, 0, 0], sizes = [1, 3, 4], strides = [1, 1, 1]} : vector<3x3x4xf32> to vector<1x3x4xf32>
      %304 = vector.shape_cast %303 : vector<1x3x4xf32> to vector<3x4xf32>
      %c1_i32_260 = arith.constant 1 : i32
      %305 = arith.addi %arg10, %c1_i32_260 : i32
      %c2_261 = arith.constant 2 : index
      %c0_262 = arith.constant 0 : index
      %306 = arith.index_cast %305 : i32 to index
      %c0_263 = arith.constant 0 : index
      %c0_264 = arith.constant 0 : index
      %307 = vector.load %arg9[%c2_261, %c0_262, %306, %c0_263, %c0_264] : memref<3x3x6x4x4xf32, #tpu.memory_space<vmem>>, vector<1x1x1x4x4xf32>
      %308 = vector.shape_cast %307 : vector<1x1x1x4x4xf32> to vector<4x4xf32>
      %309 = vector.extract_strided_slice %304 {offsets = [0, 0], sizes = [1, 4], strides = [1, 1]} : vector<3x4xf32> to vector<1x4xf32>
      %310 = vector.broadcast %309 : vector<1x4xf32> to vector<4x4xf32>
      %311 = arith.mulf %308, %310 : vector<4x4xf32>
      %312 = arith.addf %302, %311 : vector<4x4xf32>
      %c1_i32_265 = arith.constant 1 : i32
      %313 = arith.addi %arg10, %c1_i32_265 : i32
      %c2_266 = arith.constant 2 : index
      %c1_267 = arith.constant 1 : index
      %314 = arith.index_cast %313 : i32 to index
      %c0_268 = arith.constant 0 : index
      %c0_269 = arith.constant 0 : index
      %315 = vector.load %arg9[%c2_266, %c1_267, %314, %c0_268, %c0_269] : memref<3x3x6x4x4xf32, #tpu.memory_space<vmem>>, vector<1x1x1x4x4xf32>
      %316 = vector.shape_cast %315 : vector<1x1x1x4x4xf32> to vector<4x4xf32>
      %317 = vector.extract_strided_slice %304 {offsets = [1, 0], sizes = [1, 4], strides = [1, 1]} : vector<3x4xf32> to vector<1x4xf32>
      %318 = vector.broadcast %317 : vector<1x4xf32> to vector<4x4xf32>
      %319 = arith.mulf %316, %318 : vector<4x4xf32>
      %320 = arith.addf %312, %319 : vector<4x4xf32>
      %c1_i32_270 = arith.constant 1 : i32
      %321 = arith.addi %arg10, %c1_i32_270 : i32
      %c2_271 = arith.constant 2 : index
      %c2_272 = arith.constant 2 : index
      %322 = arith.index_cast %321 : i32 to index
      %c0_273 = arith.constant 0 : index
      %c0_274 = arith.constant 0 : index
      %323 = vector.load %arg9[%c2_271, %c2_272, %322, %c0_273, %c0_274] : memref<3x3x6x4x4xf32, #tpu.memory_space<vmem>>, vector<1x1x1x4x4xf32>
      %324 = vector.shape_cast %323 : vector<1x1x1x4x4xf32> to vector<4x4xf32>
      %325 = vector.extract_strided_slice %304 {offsets = [2, 0], sizes = [1, 4], strides = [1, 1]} : vector<3x4xf32> to vector<1x4xf32>
      %326 = vector.broadcast %325 : vector<1x4xf32> to vector<4x4xf32>
      %327 = arith.mulf %324, %326 : vector<4x4xf32>
      %328 = arith.addf %320, %327 : vector<4x4xf32>
      %329 = vector.extract_strided_slice %16 {offsets = [2, 0, 0], sizes = [1, 3, 4], strides = [1, 1, 1]} : vector<3x3x4xf32> to vector<1x3x4xf32>
      %330 = vector.shape_cast %329 : vector<1x3x4xf32> to vector<3x4xf32>
      %c2_i32_275 = arith.constant 2 : i32
      %331 = arith.addi %arg10, %c2_i32_275 : i32
      %c2_276 = arith.constant 2 : index
      %c0_277 = arith.constant 0 : index
      %332 = arith.index_cast %331 : i32 to index
      %c0_278 = arith.constant 0 : index
      %c0_279 = arith.constant 0 : index
      %333 = vector.load %arg9[%c2_276, %c0_277, %332, %c0_278, %c0_279] : memref<3x3x6x4x4xf32, #tpu.memory_space<vmem>>, vector<1x1x1x4x4xf32>
      %334 = vector.shape_cast %333 : vector<1x1x1x4x4xf32> to vector<4x4xf32>
      %335 = vector.extract_strided_slice %330 {offsets = [0, 0], sizes = [1, 4], strides = [1, 1]} : vector<3x4xf32> to vector<1x4xf32>
      %336 = vector.broadcast %335 : vector<1x4xf32> to vector<4x4xf32>
      %337 = arith.mulf %334, %336 : vector<4x4xf32>
      %338 = arith.addf %328, %337 : vector<4x4xf32>
      %c2_i32_280 = arith.constant 2 : i32
      %339 = arith.addi %arg10, %c2_i32_280 : i32
      %c2_281 = arith.constant 2 : index
      %c1_282 = arith.constant 1 : index
      %340 = arith.index_cast %339 : i32 to index
      %c0_283 = arith.constant 0 : index
      %c0_284 = arith.constant 0 : index
      %341 = vector.load %arg9[%c2_281, %c1_282, %340, %c0_283, %c0_284] : memref<3x3x6x4x4xf32, #tpu.memory_space<vmem>>, vector<1x1x1x4x4xf32>
      %342 = vector.shape_cast %341 : vector<1x1x1x4x4xf32> to vector<4x4xf32>
      %343 = vector.extract_strided_slice %330 {offsets = [1, 0], sizes = [1, 4], strides = [1, 1]} : vector<3x4xf32> to vector<1x4xf32>
      %344 = vector.broadcast %343 : vector<1x4xf32> to vector<4x4xf32>
      %345 = arith.mulf %342, %344 : vector<4x4xf32>
      %346 = arith.addf %338, %345 : vector<4x4xf32>
      %c2_i32_285 = arith.constant 2 : i32
      %347 = arith.addi %arg10, %c2_i32_285 : i32
      %c2_286 = arith.constant 2 : index
      %c2_287 = arith.constant 2 : index
      %348 = arith.index_cast %347 : i32 to index
      %c0_288 = arith.constant 0 : index
      %c0_289 = arith.constant 0 : index
      %349 = vector.load %arg9[%c2_286, %c2_287, %348, %c0_288, %c0_289] : memref<3x3x6x4x4xf32, #tpu.memory_space<vmem>>, vector<1x1x1x4x4xf32>
      %350 = vector.shape_cast %349 : vector<1x1x1x4x4xf32> to vector<4x4xf32>
      %351 = vector.extract_strided_slice %330 {offsets = [2, 0], sizes = [1, 4], strides = [1, 1]} : vector<3x4xf32> to vector<1x4xf32>
      %352 = vector.broadcast %351 : vector<1x4xf32> to vector<4x4xf32>
      %353 = arith.mulf %350, %352 : vector<4x4xf32>
      %354 = arith.addf %346, %353 : vector<4x4xf32>
      %355 = vector.broadcast %17 : vector<1x4xf32> to vector<4x4xf32>
      %356 = arith.addf %354, %355 : vector<4x4xf32>
      %c0_290 = arith.constant 0 : index
      %c0_291 = arith.constant 0 : index
      %357 = arith.index_cast %arg10 : i32 to index
      %c0_292 = arith.constant 0 : index
      %c0_293 = arith.constant 0 : index
      %358 = vector.load %arg8[%c0_290, %c0_291, %357, %c0_292, %c0_293] : memref<1x1x4x4x4xf32, #tpu.memory_space<vmem>>, vector<1x1x1x4x4xf32>
      %359 = vector.shape_cast %358 : vector<1x1x1x4x4xf32> to vector<4x4xf32>
      %360 = vector.shape_cast %356 : vector<4x4xf32> to vector<1x1x1x4x4xf32>
      tpu.vector_store %arg8[%c0_290, %c0_291, %357, %c0_292, %c0_293], %360 {strides = array<i32>} : memref<1x1x4x4x4xf32, #tpu.memory_space<vmem>>, vector<1x1x1x4x4xf32>,
    }
    %c4_i32_154 = arith.constant 4 : i32
    return
  }
  func.func @transform_0(%arg0: i32, %arg1: i32, %arg2: i32) -> (i32, i32, i32, i32, i32) {
    %c1_i32 = arith.constant 1 : i32
    %0 = arith.subi %arg1, %c1_i32 : i32
    %c0_i32 = arith.constant 0 : i32
    %1 = arith.maxsi %0, %c0_i32 : i32
    %c0_i32_0 = arith.constant 0 : i32
    %c0_i32_1 = arith.constant 0 : i32
    %c0_i32_2 = arith.constant 0 : i32
    return %arg0, %1, %c0_i32_0, %c0_i32_1, %arg2 : i32, i32, i32, i32, i32
  }
  func.func @transform_1(%arg0: i32, %arg1: i32, %arg2: i32) -> (i32, i32, i32, i32, i32) {
    %c0_i32 = arith.constant 0 : i32
    %c0_i32_0 = arith.constant 0 : i32
    %c0_i32_1 = arith.constant 0 : i32
    return %arg0, %arg1, %c0_i32, %c0_i32_0, %arg2 : i32, i32, i32, i32, i32
  }
  func.func @transform_2(%arg0: i32, %arg1: i32, %arg2: i32) -> (i32, i32, i32, i32, i32) {
    %c1_i32 = arith.constant 1 : i32
    %0 = arith.addi %arg1, %c1_i32 : i32
    %c3_i32 = arith.constant 3 : i32
    %1 = arith.minsi %0, %c3_i32 : i32
    %c0_i32 = arith.constant 0 : i32
    %c0_i32_0 = arith.constant 0 : i32
    %c0_i32_1 = arith.constant 0 : i32
    return %arg0, %1, %c0_i32, %c0_i32_0, %arg2 : i32, i32, i32, i32, i32
  }
  func.func @transform_3(%arg0: i32, %arg1: i32, %arg2: i32) -> (i32, i32, i32, i32) {
    %c0_i32 = arith.constant 0 : i32
    %c0_i32_0 = arith.constant 0 : i32
    %c0_i32_1 = arith.constant 0 : i32
    %c0_i32_2 = arith.constant 0 : i32
    return %c0_i32, %c0_i32_0, %c0_i32_1, %arg2 : i32, i32, i32, i32
  }
  func.func @transform_4(%arg0: i32, %arg1: i32, %arg2: i32) -> (i32, i32) {
    %c0_i32 = arith.constant 0 : i32
    %c0_i32_0 = arith.constant 0 : i32
    return %c0_i32, %arg2 : i32, i32
  }
  func.func @transform_5(%arg0: i32, %arg1: i32, %arg2: i32) -> (i32, i32, i32, i32, i32) {
    %c0_i32 = arith.constant 0 : i32
    %c0_i32_0 = arith.constant 0 : i32
    %c0_i32_1 = arith.constant 0 : i32
    return %arg0, %arg1, %c0_i32, %c0_i32_0, %arg2 : i32, i32, i32, i32, i32
  }
}

</mosaic_0001>

<bundles_post_ra>
// kernel: tpu_custom_call.1
= control target key start
LH: loop header
LB: loop body
LE: loop exit
PB: predicated region body
PF: predicated region fallthrough
CT: control target
= control target key end

     0   :  { %s2454_s0 = inlined_call_operand.hbm [shape: f32[2,4,4,4,4], index: 0, kind: input, shape index: {}]   ;;  %s2455_s1 = inlined_call_operand.hbm [shape: f32[2,4,4,4,4], index: 1, kind: input, shape index: {}]   ;;  %s2456_s2 = inlined_call_operand.hbm [shape: f32[2,4,4,4,4], index: 2, kind: input, shape index: {}]   ;;  %s2457_s3 = inlined_call_operand.hbm [shape: f32[3,3,3,4], index: 3, kind: input, shape index: {}]   ;;  %s2458_s4 = inlined_call_operand.vmem [shape: f32[1,4], index: 4, kind: input, shape index: {}]   ;;  %s2459_s5 = inlined_call_operand.hbm [shape: f32[2,4,4,4,4], index: 5, kind: output, shape index: {}]  }
   0x1   :  { %2491 = sst [smem:[#allocation33_spill]] %s2454_s0 }
   0x2   :  { %2492 = sst [smem:[#allocation34_spill]] %s2455_s1 }
   0x3   :  { %2493 = sst [smem:[#allocation35_spill]] %s2456_s2 }
   0x4   :  { %2494 = sst [smem:[#allocation36_spill]] %s2457_s3 }
   0x5   :  { %2495 = sst [smem:[#allocation37_spill]] %s2458_s4 }
   0x6   :  { %2496 = sst [smem:[#allocation38_spill]] %s2459_s5 }
   0x7   :  { %10 = vsyncpa [#allocation4], 0 }
   0x8   :  { %12 = vsyncpa [#allocation4 + $0x1], 0 }
   0x9   :  { %13 = vsyncpa [#allocation7], 0 }
   0xa   :  { %15 = vsyncpa [#allocation7 + $0x1], 0 }
   0xb   :  { %16 = vsyncpa [#allocation10], 0 }
   0xc   :  { %17 = vsyncpa [#allocation5], 0 }
   0xd   :  { %19 = vsyncpa [#allocation5 + $0x1], 0  ;;  %s1734_s18 = smov 0   ;;  %s1736_s19 = smov 0  }
   0xe   :  { %s1738_s20 = smov 0   ;;  %s1740_s21 = smov 0  }
   0xf   :  { %s1742_s22 = smov 0   ;;  %s1744_s23 = smov 0  }
  0x10   :  { %s1746_s24 = smov 0   ;;  %s1748_s25 = smov 0  }
  0x11   :  { %s1750_s26 = smov 0   ;;  %s1752_s27 = smov 0  }
  0x12   :  { %s1754_s28 = smov 0   ;;  %s1756_s29 = smov 0  }
  0x13   :  { %s1758_s30 = smov 0   ;;  %s1760_s6 = smov 0  }
  0x14 LB: > { %2497 = sst [smem:[#allocation17_spill]] %s1636_s18  ;;  %s1162_s7 = sadd.s32 4294967294, %s1688_s6   ;;  %s1688_s6 = sphi %s1760_s6, %s25_s6   ;;  %s1684_s30 = sphi %s1758_s30, %s2574_s30   ;;  %s1680_s29 = sphi %s1756_s29, %s2573_s29   ;;  %s1676_s28 = sphi %s1754_s28, %s2572_s28   ;;  %s1672_s27 = sphi %s1752_s27, %s2571_s27   ;;  %s1668_s26 = sphi %s1750_s26, %s2581_s26   ;;  %s1664_s25 = sphi %s1748_s25, %s2580_s25   ;;  %s1660_s24 = sphi %s1746_s24, %s2569_s24   ;;  %s1656_s23 = sphi %s1744_s23, %s2579_s23   ;;  %s1652_s22 = sphi %s1742_s22, %s2578_s22   ;;  %s1648_s21 = sphi %s1740_s21, %s2567_s21   ;;  %s1644_s20 = sphi %s1738_s20, %s2577_s20   ;;  %s1640_s19 = sphi %s1736_s19, %s2576_s19   ;;  %s1636_s18 = sphi %s1734_s18, %s2575_s18  }
  0x15   : > { %2498 = sst [smem:[#allocation18_spill]] %s1648_s21  ;;  %s1806_s8 = sadd.s32 1, %s1680_s29 }
  0x16   : > { %2499 = sst [smem:[#allocation19_spill]] %s1652_s22  ;;  %p42_p0 = scmp.ge.s32.totalorder %s1806_s8, 4 }
  0x17   : > { %2500 = sst [smem:[#allocation20_spill]] %s1664_s25  ;;  %s44_s9 = sadd.s32 1, %s1684_s30 }
  0x18   : > { %2501 = sst [smem:[#allocation21_spill]] %s1672_s27  ;;  %p2464_p1 = scmp.eq.s32.totalorder %s1688_s6, 0 }
  0x19   : > { %2502 = sst [smem:[#allocation22_spill]] %s1676_s28  ;;  %s2583_s9 = smov (!%p42_p0, %s44_s9), %s1684_s30 }
  0x1a   : > { %2503 = sst [smem:[#allocation23_spill]] %s1680_s29  ;;  %p2465_p2 = scmp.ne.s32.totalorder %s1656_s23, %s1652_s22 }
  0x1b   : > { %2504 = sst [smem:[#allocation24_spill]] %s1684_s30  ;;  %p2466_p3 = scmp.ne.s32.totalorder %s1652_s22, %s1648_s21 }
  0x1c   : > { %s1813_s11 = scalar_select %p42_p0, 0, %s1806_s8  }
  0x1d   : > { %p226_p4 = scmp.eq.s32.totalorder %s1162_s7, 7  ;;  %p1829_p5 = por %p2465_p2, %p2464_p1 }
  0x1e   : > { %2505 = sst [smem:[#allocation25_spill]] %s1813_s11  ;;  %p2463_p7 = scmp.lt.s32.totalorder %s1688_s6, 8 }
  0x1f   : > { %p1836_p6 = por %p226_p4, %p2466_p3  ;;  %s1842_s15 = sshll.u32 %s1684_s30, 4 }
  0x20   : > { %s294_s16 = sand.u32 1, %s1688_s6   ;;  %s296_s17 = sand.u32 1, %s1656_s23  }
  0x21   : > { %s2507_s14 = scalar_select %p1836_p6, 1, 0 }
  0x22   : > { %s1174_s10 = sshll.u32 %s296_s17, 4  ;;  %s1175_s7 = sshll.u32 %s1680_s29, 2 }
  0x23   : > { %2508 = sst [smem:[#allocation26_spill]] %s2507_s14  ;;  %s305_s12 = sadd.s32 %s1175_s7, %s1842_s15 }
  0x24   : > { %s1177_s5 = sshll.u32 %s305_s12, 6  ;;  %s298_s28 = scalar_lea.vmem [#allocation6], %s1174_s10 }
  0x25   : > { %s308_s4 = sshll.u32 %s298_s28, 4  ;;  %s2509_s1 = sld [smem:[#allocation34_spill]]  ;;  %s1853_s4 = int_to_ptr.vmem [resolvable:$true] %s308_s4 }
  0x26   : > { %p1859_p8 = pnand %p2463_p7, %p1829_p5  ;;  %s1863_s28 = scalar_lea.sflag [#allocation7], %s294_s16 }
  0x27   : > { %2511 = sst [smem:[#allocation27_spill]] %s1863_s28 }
  0x28   : > { %p1410_p10 = pneg %p1859_p8 }
  0x2b   : > { %s1851_s18 = scalar_lea.hbm %s2509_s1, %s1177_s5  ;;  %s1413_s27 = scalar_lea.hbm %s2509_s1, 2048 }
  0x2c   : > { %s1408_s10 = scalar_lea.hbm %s1851_s18, 256  ;;  %p1414_p13 = scmp.lt.u32.totalorder %s1851_s18, %s2509_s1 }
  0x2d   : > { %p1409_p9 = scmp.ne.s32.totalorder %s1851_s18, %s1408_s10  ;;  %p1415_p0 = scmp.lt.u32.totalorder %s1413_s27, %s1408_s10 }
  0x2e   : > { %p1417_p5 = scmp.lt.u32.totalorder %s1408_s10, %s1851_s18 }
  0x2f   : > { %p1411_p11 = pnand %p1410_p10, %p1409_p9  ;;  %p1416_p4 = por %p1415_p0, %p1414_p13 }
  0x31   : > { %p1412_p12 = pneg %p1411_p11  ;;  %p1418_p7 = por %p1417_p5, %p1416_p4 }
  0x33   : > { %p1419_p1 = pnand %p1418_p7, %p1412_p12 }
  0x35   : > { %1422 = shalt.err (!%p1419_p1)
}
  0x36   : > { %s1423_s16 = scalar_lea.vmem %s1853_s4, 256  ;;  %s1694_s7 = smov [#allocation6]  }
  0x37   : > { %p1424_p9 = scmp.ne.s32.totalorder %s1853_s4, %s1423_s16  ;;  %s1428_s2 = sshll.u32 %s1694_s7, 4  ;;  %s1429_s2 = int_to_ptr.vmem [resolvable:$false] %s1428_s2 }
  0x38   : > { %s1430_s5 = scalar_lea.vmem %s1429_s2, 512  ;;  %p1431_p3 = scmp.lt.s32.totalorder %s1853_s4, %s1429_s2 }
  0x39   : > { %p1426_p11 = pnand %p1424_p9, %p1410_p10  ;;  %p1432_p13 = scmp.lt.s32.totalorder %s1430_s5, %s1423_s16 }
  0x3b   : > { %p1427_p2 = pneg %p1426_p11  ;;  %p1433_p0 = por %p1432_p13, %p1431_p3 }
  0x3d   : > { %p1434_p4 = pnand %p1433_p0, %p1427_p2 }
  0x3f   : > { %1437 = shalt.err (!%p1434_p4)
}
  0x40   : > { %s2467_s10 = smov 64   ;;  %s2469_s27 = smov 4  }
  0x41   : > { %1270 = dma.hbm_to_vmem [thread:$0]  (!%p1859_p8), %s1851_s18, 256, %s1853_s4, %s1863_s28, %s2467_s10, %s2467_s10, %s2469_s27  }
  0x42   : > { %s1895_s12 = sadd.s32 4294967295, %s1688_s6   ;;  %p1165_p1 = scmp.ge.s32.totalorder %s1688_s6, 1 }
  0x43   : > { %p2473_p2 = scmp.eq.s32.totalorder %s1895_s12, 0  ;;  %p220_p3 = scmp.eq.s32.totalorder %s1895_s12, 7 }
  0x44   : > { %p233_p7 = scmp.lt.s32.totalorder %s1688_s6, 9  ;;  %p2512_p10 = scmp.ne.s32.totalorder %s1652_s22, %s1648_s21 }
  0x45   : > { %p2515_p5 = scmp.ne.s32.totalorder %s1656_s23, %s1652_s22  ;;  %s1697_s18 = smov [#allocation9]  }
  0x46   : > { %p1906_p12 = por %p2512_p10, %p2473_p2  ;;  %p1917_p8 = pnand %p1165_p1, %p233_p7 }
  0x47   : > { %p1913_p9 = por %p220_p3, %p2515_p5  ;;  %s247_s16 = sshll.u32 %s1697_s18, 4  ;;  %s248_s16 = int_to_ptr.vmem [resolvable:$true] %s247_s16 }
  0x48   : > { %s2513_s13 = scalar_select %p1906_p12, 1, 0 }
  0x49   : > { %s2516_s17 = scalar_select %p1913_p9, 1, 0 }
  0x4a   : > { %2514 = sst [smem:[#allocation28_spill]] %s2513_s13  ;;  %p1260_p11 = pneg %p1917_p8 }
  0x4b   : > { %2517 = sst [smem:[#allocation29_spill]] %s2516_s17  ;;  %s2521_s3 = sld [smem:[#allocation36_spill]] }
  0x4c   : > { %s2518_s4 = scalar_select %p1917_p8, 1, 0 }
  0x4d   : > { %p1925_p13 = pnand %p1260_p11, %p2473_p2 }
  0x4e   : > { %2519 = sst [smem:[#allocation30_spill]] %s2518_s4 }
  0x4f   : > { %p1440_p1 = pneg %p1925_p13 }
  0x51   : > { %s1438_s10 = scalar_lea.hbm %s2521_s3, 576 }
  0x52   : > { %p1439_p4 = scmp.ne.s32.totalorder %s2521_s3, %s1438_s10  ;;  %p1445_p10 = scmp.lt.u32.totalorder %s1438_s10, %s2521_s3 }
  0x54   : > { %p1441_p3 = pnand %p1440_p1, %p1439_p4 }
  0x56   : > { %p1442_p7 = pneg %p1441_p3 }
  0x58   : > { %p1447_p5 = pnand %p1445_p10, %p1442_p7 }
  0x5a   : > { %1450 = shalt.err (!%p1447_p5)
}
  0x5b   : > { %s1451_s21 = scalar_lea.vmem %s248_s16, 576  ;;  %p1459_p6 = scmp.lt.s32.totalorder %s248_s16, %s248_s16 }
  0x5c   : > { %p1452_p11 = scmp.ne.s32.totalorder %s248_s16, %s1451_s21  ;;  %p1460_p9 = scmp.lt.s32.totalorder %s1451_s21, %s1451_s21 }
  0x5e   : > { %p1454_p2 = pnand %p1452_p11, %p1440_p1  ;;  %p1461_p12 = por %p1460_p9, %p1459_p6 }
  0x60   : > { %p1455_p0 = pneg %p1454_p2 }
  0x62   : > { %p1462_p8 = pnand %p1461_p12, %p1455_p0 }
  0x64   : > { %1465 = shalt.err (!%p1462_p8)
}
  0x65   : > { %s2522_s1 = smov 4   ;;  %s2523_s27 = smov 64  }
  0x66   : > { %1263 = dma.hbm_to_vmem [thread:$0]  (!%p1925_p13), %s2521_s3, 576, %s248_s16, [#allocation10], %s2523_s27, %s2523_s27, %s2522_s1  }
  0x67   : > { %p2524_p6 = scmp.ge.s32.totalorder %s2583_s9, 2  ;;  %s1163_s21 = sadd.s32 4294967295, %s1680_s29 }
  0x68   : > { %s1164_s14 = sadd.s32 4294967295, %s1813_s11  ;;  %p49_p2 = scmp.gt.s32.totalorder %s1163_s21, 0 }
  0x69   : > { %s2585_s9 = smov (%p2524_p6, %s2583_s9), 0  ;;  %p52_p12 = scmp.gt.s32.totalorder %s1164_s14, 0 }
  0x6a   : > { %2525 = sst [smem:[#allocation31_spill]] %s2585_s9  ;;  %s1958_s10 = ssub.s32 %s1684_s30, %s2585_s9 }
  0x6b   : > { %s61_s7 = sadd.s32 1, %s1668_s26  ;;  %s2587_s21 = smov (!%p49_p2, %s1163_s21), 0 }
  0x6c   : > { %s2589_s14 = smov (!%p52_p12, %s1164_s14), 0  ;;  %p68_p9 = scmp.ne.s32.totalorder %s1668_s26, %s1664_s25 }
  0x6d   : > { %p74_p8 = scmp.ne.s32.totalorder %s1664_s25, %s1660_s24  ;;  %s55_s16 = ssub.s32 %s2587_s21, %s2589_s14 }
  0x6e   : > { %s2526_s18 = ssub.s32 %s1680_s29, %s1813_s11  ;;  %s56_s5 = sor.u32 %s55_s16, %s1958_s10 }
  0x6f   : > { %s86_s2 = sor.u32 %s2526_s18, %s1958_s10  ;;  %p2527_p13 = scmp.eq.s32.totalorder %s1688_s6, 0 }
  0x70   : > { %p59_p4 = scmp.eq.s32.totalorder %s56_s5, 0  ;;  %p2529_p1 = scmp.eq.s32.totalorder %s1895_s12, 0 }
  0x71   : > { %p1972_p0 = por %p2527_p13, %p68_p9  ;;  %p89_p7 = scmp.eq.s32.totalorder %s86_s2, 0 }
  0x72   : > { %p1978_p3 = por %p2529_p1, %p74_p8  ;;  %s267_s30 = sand.u32 1, %s1668_s26  }
  0x73   : > { %s1984_s24 = scalar_select %p59_p4, %s1668_s26, %s61_s7  }
  0x74   : > { %s2532_s14 = sadd.s32 1, %s1656_s23  ;;  %s1169_s16 = sshll.u32 %s267_s30, 4 }
  0x75   : > { %2531 = sst [smem:[#allocation32_spill]] %s1984_s24  ;;  %s1171_s29 = sshll.u32 %s2587_s21, 2 }
  0x76   : > { %s1989_s18 = scalar_select %p89_p7, %s1656_s23, %s2532_s14  }
  0x77   : > { %s281_s17 = sadd.s32 %s1842_s15, %s1171_s29  ;;  %s271_s13 = scalar_lea.vmem [#allocation3], %s1169_s16 }
  0x78   : > { %s284_s22 = sshll.u32 %s271_s13, 4  ;;  %s1173_s25 = sshll.u32 %s281_s17, 6  ;;  %s1992_s22 = int_to_ptr.vmem [resolvable:$true] %s284_s22 }
  0x79   : > { %s2533_s0 = sld [smem:[#allocation33_spill]]  ;;  %p2534_p10 = scmp.lt.s32.totalorder %s1688_s6, 8 }
  0x7a   : > { %s2007_s29 = scalar_lea.sflag [#allocation4], %s267_s30 }
  0x7b   : > { %p2003_p5 = pnand %p2534_p10, %p1972_p0 }
  0x7d   : > { %p1468_p6 = pneg %p2003_p5 }
  0x7f   : > { %s1997_s28 = scalar_lea.hbm %s2533_s0, %s1173_s25  ;;  %s1471_s17 = scalar_lea.hbm %s2533_s0, 2048 }
  0x80   : > { %s1466_s13 = scalar_lea.hbm %s1997_s28, 256  ;;  %p1472_p9 = scmp.lt.u32.totalorder %s1997_s28, %s2533_s0 }
  0x81   : > { %p1467_p11 = scmp.ne.s32.totalorder %s1997_s28, %s1466_s13  ;;  %p1473_p8 = scmp.lt.u32.totalorder %s1471_s17, %s1466_s13 }
  0x82   : > { %p1475_p0 = scmp.lt.u32.totalorder %s1466_s13, %s1997_s28 }
  0x83   : > { %p1469_p2 = pnand %p1468_p6, %p1467_p11  ;;  %p1474_p13 = por %p1473_p8, %p1472_p9 }
  0x85   : > { %p1470_p12 = pneg %p1469_p2  ;;  %p1476_p4 = por %p1475_p0, %p1474_p13 }
  0x87   : > { %p1477_p1 = pnand %p1476_p4, %p1470_p12 }
  0x89   : > { %1480 = shalt.err (!%p1477_p1)
}
  0x8a   : > { %s1481_s30 = scalar_lea.vmem %s1992_s22, 256  ;;  %s1698_s2 = smov [#allocation3]  }
  0x8b   : > { %p1482_p7 = scmp.ne.s32.totalorder %s1992_s22, %s1481_s30  ;;  %s1486_s14 = sshll.u32 %s1698_s2, 4  ;;  %s1487_s14 = int_to_ptr.vmem [resolvable:$false] %s1486_s14 }
  0x8c   : > { %s1488_s16 = scalar_lea.vmem %s1487_s14, 512  ;;  %p1489_p2 = scmp.lt.s32.totalorder %s1992_s22, %s1487_s14 }
  0x8d   : > { %p1484_p10 = pnand %p1482_p7, %p1468_p6  ;;  %p1490_p9 = scmp.lt.s32.totalorder %s1488_s16, %s1481_s30 }
  0x8f   : > { %p1485_p11 = pneg %p1484_p10  ;;  %p1491_p8 = por %p1490_p9, %p1489_p2 }
  0x91   : > { %p1492_p13 = pnand %p1491_p8, %p1485_p11 }
  0x93   : > { %1495 = shalt.err (!%p1492_p13)
}
  0x94   : > { %s2536_s5 = sld [smem:[#allocation17_spill]]  ;;  %p115_p6 = scmp.lt.s32.totalorder %s1806_s8, 3 }
  0x95   : > { %1267 = dma.hbm_to_vmem [thread:$0]  (!%p2003_p5), %s1997_s28, 256, %s1992_s22, %s2007_s29, %s2523_s27, %s2523_s27, %s2522_s1  }
  0x96   : > { %s117_s7 = sadd.s32 1, %s1813_s11  ;;  %s127_s13 = sadd.s32 1, %s1644_s20 }
  0x97   : > { %s2591_s8 = smov (!%p115_p6, %s1806_s8), 3  ;;  %p118_p12 = scmp.lt.s32.totalorder %s117_s7, 3 }
  0x98   : > { %p134_p0 = scmp.ne.s32.totalorder %s1644_s20, %s1640_s19  ;;  %s320_s3 = sand.u32 1, %s1644_s20  }
  0x99   : > { %s2593_s7 = smov (!%p118_p12, %s117_s7), 3  ;;  %p2537_p1 = scmp.eq.s32.totalorder %s1688_s6, 0 }
  0x9a   : > { %p140_p4 = scmp.ne.s32.totalorder %s1640_s19, %s2536_s5  ;;  %p2539_p10 = scmp.eq.s32.totalorder %s1895_s12, 0 }
  0x9b   : > { %p2049_p7 = por %p134_p0, %p2537_p1  ;;  %s121_s28 = ssub.s32 %s2591_s8, %s2593_s7 }
  0x9c   : > { %p2055_p5 = por %p140_p4, %p2539_p10  ;;  %s1178_s29 = sshll.u32 %s320_s3, 4 }
  0x9d   : > { %s122_s17 = sor.u32 %s121_s28, %s1958_s10  ;;  %s1179_s4 = sshll.u32 %s2591_s8, 2 }
  0x9e   : > { %s2540_s22 = scalar_select %p2055_p5, 1, 0 }
  0x9f   : > { %p125_p11 = scmp.eq.s32.totalorder %s122_s17, 0  ;;  %s332_s21 = sadd.s32 %s1179_s4, %s1842_s15 }
  0xa0   : > { %s322_s30 = scalar_lea.vmem [#allocation8], %s1178_s29  ;;  %s1181_s16 = sshll.u32 %s332_s21, 6 }
  0xa1   : > { %s335_s2 = sshll.u32 %s322_s30, 4  ;;  %s2541_s11 = sld [smem:[#allocation35_spill]]  ;;  %s2064_s2 = int_to_ptr.vmem [resolvable:$true] %s335_s2 }
  0xa2   : > { %s2062_s14 = scalar_select %p125_p11, %s1644_s20, %s127_s13  }
  0xa3   : > { %p2542_p2 = scmp.lt.s32.totalorder %s1688_s6, 8 }
  0xa5   : > { %p2075_p9 = pnand %p2542_p2, %p2049_p7 }
  0xa7   : > { %s2069_s24 = scalar_lea.hbm %s2541_s11, %s1181_s16  ;;  %p1498_p13 = pneg %p2075_p9 }
  0xa8   : > { %s1496_s15 = scalar_lea.hbm %s2069_s24, 256  ;;  %s1501_s7 = scalar_lea.hbm %s2541_s11, 2048 }
  0xa9   : > { %p1497_p8 = scmp.ne.s32.totalorder %s2069_s24, %s1496_s15  ;;  %p1502_p0 = scmp.lt.u32.totalorder %s2069_s24, %s2541_s11 }
  0xaa   : > { %p1503_p4 = scmp.lt.u32.totalorder %s1501_s7, %s1496_s15  ;;  %p1505_p7 = scmp.lt.u32.totalorder %s1496_s15, %s2069_s24 }
  0xab   : > { %p1499_p6 = pnand %p1498_p13, %p1497_p8 }
  0xac   : > { %p1504_p1 = por %p1503_p4, %p1502_p0 }
  0xad   : > { %p1500_p12 = pneg %p1499_p6 }
  0xae   : > { %p1506_p10 = por %p1505_p7, %p1504_p1 }
  0xb0   : > { %p1507_p11 = pnand %p1506_p10, %p1500_p12 }
  0xb2   : > { %1510 = shalt.err (!%p1507_p11)
}
  0xb3   : > { %s1511_s25 = scalar_lea.vmem %s2064_s2, 256  ;;  %s1699_s28 = smov [#allocation8]  }
  0xb4   : > { %p1512_p2 = scmp.ne.s32.totalorder %s2064_s2, %s1511_s25  ;;  %s1516_s29 = sshll.u32 %s1699_s28, 4  ;;  %s1517_s29 = int_to_ptr.vmem [resolvable:$false] %s1516_s29 }
  0xb5   : > { %s1518_s17 = scalar_lea.vmem %s1517_s29, 512  ;;  %p1519_p5 = scmp.lt.s32.totalorder %s2064_s2, %s1517_s29 }
  0xb6   : > { %p1514_p8 = pnand %p1512_p2, %p1498_p13  ;;  %p1520_p0 = scmp.lt.s32.totalorder %s1518_s17, %s1511_s25 }
  0xb8   : > { %p1515_p6 = pneg %p1514_p8  ;;  %p1521_p4 = por %p1520_p0, %p1519_p5 }
  0xba   : > { %p1522_p1 = pnand %p1521_p4, %p1515_p6 }
  0xbc   : > { %1525 = shalt.err (!%p1522_p1)
}
  0xbd   : > { %s2544_s4 = sld [smem:[#allocation27_spill]]  ;;  %s2545_s21 = sld [smem:[#allocation30_spill]] }
  0xc3   : > { %1273 = dma.hbm_to_vmem [thread:$0]  (!%p2075_p9), %s2069_s24, 256, %s2064_s2, %s2544_s4, %s2523_s27, %s2523_s27, %s2522_s1  }
  0xc4   : > { %p2546_p13 = scmp.ne.s32.totalorder %s2545_s21, 0 }
  0xc5   : > { %s2547_s30 = sld [smem:[#allocation20_spill]] (!%p2546_p13) }
  0xc6   : > { %347 = sbr.rel (%p2546_p13) target bundleno = 340 (0x154), region = 40 }
  0xcb   : > { %s349_s16 = sand.u32 (!%p2546_p13), 1, %s2547_s30  }
  0xcc   : > { %s1183_s5 = sshll.u32 (!%p2546_p13), %s349_s16, 4  ;;  %s350_s15 = scalar_lea.sflag (!%p2546_p13), [#allocation4], %s349_s16 }
  0xcd   : > { %s2111_s0 = scalar_lea.vmem [#allocation3], %s1183_s5 }
  0xce   : > { %1615 = dma.done.wait (%p1978_p3), %s350_s15, 256  }
  0xcf   : > { %1617 = vsyncadd (%p1978_p3), %s350_s15, 4294967040  ;;  %s2548_s8 = sld [smem:[#allocation19_spill]]  ;;  %s2549_s10 = sld [smem:[#allocation28_spill]] }
  0xd0   : > { %s358_s1 = sand.u32 1, %s1895_s12  }
  0xd1   : > { %s359_s2 = scalar_lea.sflag [#allocation7], %s358_s1 }
  0xd5   : > { %s360_s27 = sand.u32 1, %s2548_s8   ;;  %p2550_p5 = scmp.ne.s32.totalorder %s2549_s10, 0 }
  0xd6   : > { %s2121_s24 = sshll.u32 %s360_s27, 4 }
  0xd7   : > { %s2124_s7 = scalar_lea.vmem [#allocation6], %s2121_s24 }
  0xd8   : > { %1619 = dma.done.wait (%p2550_p5), %s359_s2, 256  }
  0xd9   : > { %1621 = vsyncadd (%p2550_p5), %s359_s2, 4294967040  ;;  %s369_s9 = sand.u32 1, %s1640_s19   ;;  %p2551_p3 = scmp.ne.s32.totalorder %s2540_s22, 0 }
  0xda   : > { %s1185_s13 = sshll.u32 %s369_s9, 4 }
  0xdb   : > { %s2131_s3 = scalar_lea.vmem [#allocation8], %s1185_s13 }
  0xdc   : > { %1623 = dma.done.wait (%p2551_p3), %s359_s2, 256  }
  0xdd   : > { %1625 = vsyncadd (%p2551_p3), %s359_s2, 4294967040  ;;  %p2552_p9 = scmp.eq.s32.totalorder %s1895_s12, 0 }
  0xdf   : > { %1627 = dma.done.wait (%p2552_p9), [#allocation10], 576   ;;  %p2553_p12 = pmov %p2552_p9 }
  0xe0   : > { %s2554_s25 = sld [smem:[#allocation21_spill]]  ;;  %vm470_vm0 = vcmask 27648   ;;  %v1700_v0 = vmov 0.0   ;;  %vm464_vm1 = vcmask 1040384   ;;  %vm488_vm2 = vcmask 1042432   ;;  %s2555_s21 = sld [smem:[#allocation37_spill]] }
  0xe1   : > { %1629 = vsyncadd (%p2553_p12), [#allocation10], 4294966720  ;;  %498 = vst.msk [vmem:[#allocation2] sm:$0xf] %vm470_vm0, %v1700_v0  ;;  %v424_v2 = vld [vmem:[#allocation9] sm:$0x7] }
  0xe2   : > { %500 = vst.msk [vmem:[#allocation2 + $0x14] sm:$0xf] %vm470_vm0, %v1700_v0  ;;  %502 = vst.msk [vmem:[#allocation2 + $0x18] sm:$0xf] %vm470_vm0, %v1700_v0  ;;  %v425_v3 = vld [vmem:[#allocation9 + $0x4] sm:$0x7] }
  0xe3   : > { %504 = vst.msk [vmem:[#allocation2 + $0x2c] sm:$0xf] %vm470_vm0, %v1700_v0  ;;  %506 = vst.msk [vmem:[#allocation2 + $0x30] sm:$0xf] %vm470_vm0, %v1700_v0  ;;  %v426_v4 = vld [vmem:[#allocation9 + $0x8] sm:$0x7] }
  0xe4   : > { %508 = vst.msk [vmem:[#allocation2 + $0x44] sm:$0xf] %vm470_vm0, %v1700_v0  ;;  %557 = vst.msk [vmem:[#allocation2 + $0x48] sm:$0xf] %vm470_vm0, %v1700_v0  ;;  %v2163_v6 = vld [vmem:[#allocation9 + $0xc] sm:$0x7] }
  0xe5   : > { %559 = vst.msk [vmem:[#allocation2 + $0x5c] sm:$0xf] %vm470_vm0, %v1700_v0  ;;  %561 = vst.msk [vmem:[#allocation2 + $0x60] sm:$0xf] %vm470_vm0, %v1700_v0  ;;  %v2165_v7 = vld [vmem:[#allocation9 + $0x10] sm:$0x7] }
  0xe6   : > { %p433_p7 = scmp.gt.s32.totalorder %s2554_s25, 0  ;;  %p436_p10 = scmp.lt.s32.totalorder %s2554_s25, 3  ;;  %563 = vst.msk [vmem:[#allocation2 + $0x74] sm:$0xf] %vm470_vm0, %v1700_v0  ;;  %565 = vst.msk [vmem:[#allocation2 + $0x78] sm:$0xf] %vm470_vm0, %v1700_v0 }
  0xe7   : > { %567 = vst.msk [vmem:[#allocation2 + $0x8c] sm:$0xf] %vm470_vm0, %v1700_v0  ;;  %616 = vst.msk [vmem:[#allocation2 + $0x90] sm:$0xf] %vm470_vm0, %v1700_v0  ;;  %v2167_v8 = vld [vmem:[#allocation9 + $0x14] sm:$0x7] }
  0xe8   : > { %s434_s28 = scalar_select %p433_p7, 1, 0  ;;  %618 = vst.msk [vmem:[#allocation2 + $0xa4] sm:$0xf] %vm470_vm0, %v1700_v0  ;;  %620 = vst.msk [vmem:[#allocation2 + $0xa8] sm:$0xf] %vm470_vm0, %v1700_v0 }
  0xe9   : > { %622 = vst.msk [vmem:[#allocation2 + $0xbc] sm:$0xf] %vm470_vm0, %v1700_v0  ;;  %624 = vst.msk [vmem:[#allocation2 + $0xc0] sm:$0xf] %vm470_vm0, %v1700_v0  ;;  %s437_s12 = scalar_select %p436_p10, 1, 0 }
  0xea   : > { %626 = vst.msk [vmem:[#allocation2 + $0xd4] sm:$0xf] %vm470_vm0, %v1700_v0  ;;  %s435_s22 = scvt.s32.f32 %s434_s28  ;;  %v430_v12 = vld [vmem:[#allocation9 + $0x18] sm:$0x7]  ;;  %v431_v13 = vld [vmem:[#allocation9 + $0x1c] sm:$0x7] }
  0xeb   : > { %s438_s29 = scvt.s32.f32 %s437_s12  ;;  %v432_v14 = vld [vmem:[#allocation9 + $0x20] sm:$0x7]  ;;  %v2184_v18 = vld [vmem:[%s2555_s21] ss:$0 sm:$0xff]  ;;  %v449_v20 = vld [vmem:[%s2111_s0 + $0x4] sm:$0xf] }
  0xec   : > { %v439_v1 = vstv %s435_s22  ;;  %v448_v19 = vld [vmem:[%s2111_s0] sm:$0xf]  ;;  %v457_v22 = vrot.slane %v449_v20, 7  ;;  %477 = vst.msk [vmem:[#allocation2 + $0x20] sm:$0xf] %vm470_vm0, %v449_v20  ;;  %v481_v28 = vrot.slane %v449_v20, 1 }
  0xed   : > { %v443_v5 = vstv %s438_s29  ;;  %v2169_v9 = vmul.f32 %v439_v1, %v424_v2  ;;  %v2171_v10 = vmul.f32 %v439_v1, %v425_v3  ;;  %v2173_v11 = vmul.f32 %v439_v1, %v426_v4  ;;  %476 = vst.msk [vmem:[#allocation2 + $0x1c] sm:$0xf] %vm470_vm0, %v448_v19  ;;  %v450_v23 = vld [vmem:[%s2111_s0 + $0x8] sm:$0xf]  ;;  %v451_v24 = vld [vmem:[%s2111_s0 + $0xc] sm:$0xf] }
  0xee   : > { %v2175_v15 = vmul.f32 %v443_v5, %v430_v12  ;;  %v2177_v16 = vmul.f32 %v443_v5, %v431_v13  ;;  %v2179_v17 = vmul.f32 %v443_v5, %v432_v14  ;;  %v456_v21 = vrot.slane %v448_v19, 7  ;;  %478 = vst.msk [vmem:[#allocation2 + $0x24] sm:$0xf] %vm470_vm0, %v450_v23  ;;  %479 = vst.msk [vmem:[#allocation2 + $0x28] sm:$0xf] %vm470_vm0, %v451_v24  ;;  %s414_s30 = scalar_lea.vmem [#allocation11], %s2121_s24 }
  0xef   : > { %v458_v25 = vrot.slane %v450_v23, 7  ;;  %v459_v26 = vrot.slane %v451_v24, 7  ;;  %v480_v27 = vrot.slane %v448_v19, 1  ;;  %v509_v29 = vld [vmem:[%s2124_s7] sm:$0xf]  ;;  %v466_v31 = vsel %vm464_vm1, 0.0, %v457_v22 }
  0xf0   : > { %v465_v30 = vsel %vm464_vm1, 0.0, %v456_v21  ;;  %v482_v32 = vrot.slane %v450_v23, 1  ;;  %v483_v33 = vrot.slane %v451_v24, 1  ;;  %535 = vst.msk [vmem:[#allocation2 + $0x64] sm:$0xf] %vm470_vm0, %v509_v29  ;;  %v490_v38 = vsel %vm488_vm2, %v481_v28, 0.0 }
  0xf1   : > { %v510_v34 = vld [vmem:[%s2124_s7 + $0x4] sm:$0xf]  ;;  %471 = vst.msk [vmem:[#allocation2 + $0x4] sm:$0xf] %vm470_vm0, %v465_v30  ;;  %472 = vst.msk [vmem:[#allocation2 + $0x8] sm:$0xf] %vm470_vm0, %v466_v31 }
  0xf2   : > { %v467_v35 = vsel %vm464_vm1, 0.0, %v458_v25  ;;  %v468_v36 = vsel %vm464_vm1, 0.0, %v459_v26  ;;  %v489_v37 = vsel %vm488_vm2, %v480_v27, 0.0  ;;  %536 = vst.msk [vmem:[#allocation2 + $0x68] sm:$0xf] %vm470_vm0, %v510_v34  ;;  %v491_v40 = vsel %vm488_vm2, %v482_v32, 0.0 }
  0xf3   : > { %v511_v39 = vld [vmem:[%s2124_s7 + $0x8] sm:$0xf]  ;;  %473 = vst.msk [vmem:[#allocation2 + $0xc] sm:$0xf] %vm470_vm0, %v467_v35  ;;  %474 = vst.msk [vmem:[#allocation2 + $0x10] sm:$0xf] %vm470_vm0, %v468_v36 }
  0xf4   : > { %494 = vst.msk [vmem:[#allocation2 + $0x34] sm:$0xf] %vm470_vm0, %v489_v37  ;;  %495 = vst.msk [vmem:[#allocation2 + $0x38] sm:$0xf] %vm470_vm0, %v490_v38  ;;  %v492_v41 = vsel %vm488_vm2, %v483_v33, 0.0  ;;  %v517_v42 = vrot.slane %v509_v29, 7 }
  0xf5   : > { %v518_v43 = vrot.slane %v510_v34, 7  ;;  %537 = vst.msk [vmem:[#allocation2 + $0x6c] sm:$0xf] %vm470_vm0, %v511_v39  ;;  %v512_v44 = vld [vmem:[%s2124_s7 + $0xc] sm:$0xf]  ;;  %v519_v45 = vrot.slane %v511_v39, 7 }
  0xf6   : > { %496 = vst.msk [vmem:[#allocation2 + $0x3c] sm:$0xf] %vm470_vm0, %v491_v40  ;;  %497 = vst.msk [vmem:[#allocation2 + $0x40] sm:$0xf] %vm470_vm0, %v492_v41  ;;  %v520_v46 = vrot.slane %v512_v44, 7  ;;  %v539_v47 = vrot.slane %v509_v29, 1 }
  0xf7   : > { %538 = vst.msk [vmem:[#allocation2 + $0x70] sm:$0xf] %vm470_vm0, %v512_v44  ;;  %v540_v48 = vrot.slane %v510_v34, 1  ;;  %v568_v49 = vld [vmem:[%s2131_s3] sm:$0xf]  ;;  %v525_v50 = vsel %vm464_vm1, 0.0, %v517_v42 }
  0xf8   : > { %v526_v51 = vsel %vm464_vm1, 0.0, %v518_v43  ;;  %v541_v52 = vrot.slane %v511_v39, 1  ;;  %v542_v53 = vrot.slane %v512_v44, 1  ;;  %594 = vst.msk [vmem:[#allocation2 + $0xac] sm:$0xf] %vm470_vm0, %v568_v49  ;;  %v527_v55 = vsel %vm464_vm1, 0.0, %v519_v45 }
  0xf9   : > { %v569_v54 = vld [vmem:[%s2131_s3 + $0x4] sm:$0xf]  ;;  %530 = vst.msk [vmem:[#allocation2 + $0x4c] sm:$0xf] %vm470_vm0, %v525_v50  ;;  %531 = vst.msk [vmem:[#allocation2 + $0x50] sm:$0xf] %vm470_vm0, %v526_v51 }
  0xfa   : > { %v528_v56 = vsel %vm464_vm1, 0.0, %v520_v46  ;;  %v547_v57 = vsel %vm488_vm2, %v539_v47, 0.0  ;;  %v548_v58 = vsel %vm488_vm2, %v540_v48, 0.0  ;;  %595 = vst.msk [vmem:[#allocation2 + $0xb0] sm:$0xf] %vm470_vm0, %v569_v54  ;;  %v549_v60 = vsel %vm488_vm2, %v541_v52, 0.0 }
  0xfb   : > { %v570_v59 = vld [vmem:[%s2131_s3 + $0x8] sm:$0xf]  ;;  %532 = vst.msk [vmem:[#allocation2 + $0x54] sm:$0xf] %vm470_vm0, %v527_v55  ;;  %533 = vst.msk [vmem:[#allocation2 + $0x58] sm:$0xf] %vm470_vm0, %v528_v56 }
  0xfc   : > { %552 = vst.msk [vmem:[#allocation2 + $0x7c] sm:$0xf] %vm470_vm0, %v547_v57  ;;  %553 = vst.msk [vmem:[#allocation2 + $0x80] sm:$0xf] %vm470_vm0, %v548_v58  ;;  %v550_v61 = vsel %vm488_vm2, %v542_v53, 0.0  ;;  %v576_v62 = vrot.slane %v568_v49, 7 }
  0xfd   : > { %v577_v63 = vrot.slane %v569_v54, 7  ;;  %596 = vst.msk [vmem:[#allocation2 + $0xb4] sm:$0xf] %vm470_vm0, %v570_v59  ;;  %v571_v0 = vld [vmem:[%s2131_s3 + $0xc] sm:$0xf]  ;;  %v578_v1 = vrot.slane %v570_v59, 7 }
  0xfe   : > { %554 = vst.msk [vmem:[#allocation2 + $0x84] sm:$0xf] %vm470_vm0, %v549_v60  ;;  %555 = vst.msk [vmem:[#allocation2 + $0x88] sm:$0xf] %vm470_vm0, %v550_v61  ;;  %v579_v2 = vrot.slane %v571_v0, 7  ;;  %v598_v3 = vrot.slane %v568_v49, 1 }
  0xff   : > { %597 = vst.msk [vmem:[#allocation2 + $0xb8] sm:$0xf] %vm470_vm0, %v571_v0  ;;  %v599_v4 = vrot.slane %v569_v54, 1  ;;  %v584_v5 = vsel %vm464_vm1, 0.0, %v576_v62  ;;  %v585_v12 = vsel %vm464_vm1, 0.0, %v577_v63  ;;  %v600_v13 = vrot.slane %v570_v59, 1 }
 0x100   : > { %v601_v14 = vrot.slane %v571_v0, 1  ;;  %589 = vst.msk [vmem:[#allocation2 + $0x94] sm:$0xf] %vm470_vm0, %v584_v5  ;;  %590 = vst.msk [vmem:[#allocation2 + $0x98] sm:$0xf] %vm470_vm0, %v585_v12  ;;  %v586_v19 = vsel %vm464_vm1, 0.0, %v578_v1 }
 0x101   : > { %v587_v20 = vsel %vm464_vm1, 0.0, %v579_v2  ;;  %v606_v21 = vsel %vm488_vm2, %v598_v3, 0.0  ;;  %v607_v22 = vsel %vm488_vm2, %v599_v4, 0.0  ;;  %591 = vst.msk [vmem:[#allocation2 + $0x9c] sm:$0xf] %vm470_vm0, %v586_v19  ;;  %v608_v23 = vsel %vm488_vm2, %v600_v13, 0.0 }
 0x102   : > { %592 = vst.msk [vmem:[#allocation2 + $0xa0] sm:$0xf] %vm470_vm0, %v587_v20  ;;  %611 = vst.msk [vmem:[#allocation2 + $0xc4] sm:$0xf] %vm470_vm0, %v606_v21  ;;  %v609_v24 = vsel %vm488_vm2, %v601_v14, 0.0  ;;  %s2259_s16 = smov 0  }
 0x103   : > { %612 = vst.msk [vmem:[#allocation2 + $0xc8] sm:$0xf] %vm470_vm0, %v607_v22  ;;  %613 = vst.msk [vmem:[#allocation2 + $0xcc] sm:$0xf] %vm470_vm0, %v608_v23 }
 0x104   : > { %614 = vst.msk [vmem:[#allocation2 + $0xd0] sm:$0xf] %vm470_vm0, %v609_v24 }
 0x105 LB: >> { %v636_v25 = vlaneseq  ;;  %s1188_s5 = sshll.u32 %s1692_s16, 2  ;;  %s632_s16 = sadd.s32 1, %s1692_s16   ;;  %s1692_s16 = sphi %s2259_s16, %s632_s16  }
 0x106   : >> { %s2271_s15 = scalar_lea.vmem [#allocation2], %s1188_s5  ;;  %s885_s0 = scalar_lea.vmem %s414_s30, %s1188_s5 [#allocation11] }
 0x107   : >> { %v637_v26 = vshrl.u32 %v636_v25, 7  ;;  %p629_p11 = scmp.ge.s32.totalorder %s632_s16, 4  }
 0x108   : > { %s2556_s8 = sld [smem:[#allocation21_spill]] (%p629_p11)  ;;  %s2557_s10 = sld [smem:[#allocation22_spill]] (%p629_p11) }
 0x109   : >> { %v2265_v27 = vsub.s32 0, %v637_v26  ;;  %v2267_v28 = vsub.s32 1, %v637_v26  ;;  %v2275_v31 = vsub.s32 2, %v637_v26  ;;  %s2559_s2 = sld [smem:[#allocation29_spill]] (%p629_p11)  ;;  %s904_s13 = sshll.u32 (%p629_p11), %s414_s30, 4  ;;  %s2369_s13 = int_to_ptr.vmem [resolvable:$true] %s904_s13 }
 0x10a   : > { %s2560_s22 = sld [smem:[#allocation38_spill]] (%p629_p11)  ;;  %s2378_s4 = scalar_lea.sflag (%p629_p11), [#allocation5], %s360_s27 }
 0x10b   : >> { %v635_v29 = vld [vmem:[%s2271_s15] sm:$0xf]  ;;  %v1190_v30 = vld [vmem:[%s2271_s15 + $0x18] sm:$0xf]  ;;  %v639_v32 = vrot.slane %v2169_v9, %v2265_v27  ;;  %v648_v33 = vrot.slane %v2169_v9, %v2267_v28  ;;  %v1192_v34 = vld [vmem:[%s2271_s15 + $0x30] sm:$0xf]  ;;  %v667_v35 = vrot.slane %v2171_v10, %v2265_v27  ;;  %v657_v36 = vrot.slane %v2169_v9, %v2275_v31 }
 0x10c   : >> { %v1194_v37 = vld [vmem:[%s2271_s15 + $0x4] sm:$0xf]  ;;  %v676_v40 = vrot.slane %v2171_v10, %v2267_v28  ;;  %v1196_v42 = vld [vmem:[%s2271_s15 + $0x1c] sm:$0xf]  ;;  %v685_v45 = vrot.slane %v2171_v10, %v2275_v31  ;;  %v1198_v46 = vld [vmem:[%s2271_s15 + $0x34] sm:$0xf]  ;;  %v695_v49 = vrot.slane %v2173_v11, %v2265_v27  ;;  %v704_v53 = vrot.slane %v2173_v11, %v2267_v28 }
 0x10d   : >> { %v640_v38 = vmul.f32 %v639_v32, %v635_v29  ;;  %v649_v39 = vmul.f32 %v1190_v30, %v648_v33  ;;  %v658_v41 = vmul.f32 %v1192_v34, %v657_v36  ;;  %v668_v44 = vmul.f32 %v1194_v37, %v667_v35  ;;  %v1200_v50 = vld [vmem:[%s2271_s15 + $0x8] sm:$0xf]  ;;  %v1202_v54 = vld [vmem:[%s2271_s15 + $0x20] sm:$0xf]  ;;  %v1204_v58 = vld [vmem:[%s2271_s15 + $0x38] sm:$0xf] }
 0x10e   : >> { %v677_v48 = vmul.f32 %v1196_v42, %v676_v40  ;;  %v686_v52 = vmul.f32 %v1198_v46, %v685_v45  ;;  %v696_v56 = vmul.f32 %v1200_v50, %v695_v49  ;;  %v713_v57 = vrot.slane %v2173_v11, %v2275_v31  ;;  %v1206_v62 = vld [vmem:[%s2271_s15 + $0x48] sm:$0xf]  ;;  %v1208_v2 = vld [vmem:[%s2271_s15 + $0x60] sm:$0xf]  ;;  %v1210_v12 = vld [vmem:[%s2271_s15 + $0x78] sm:$0xf] }
 0x10f   : >> { %v650_v43 = vadd.f32 %v649_v39, %v640_v38  ;;  %v705_v60 = vmul.f32 %v1202_v54, %v704_v53  ;;  %v722_v61 = vrot.slane %v2163_v6, %v2265_v27  ;;  %v731_v1 = vrot.slane %v2163_v6, %v2267_v28  ;;  %v1212_v20 = vld [vmem:[%s2271_s15 + $0x4c] sm:$0xf]  ;;  %v1214_v24 = vld [vmem:[%s2271_s15 + $0x64] sm:$0xf]  ;;  %v1216_v30 = vld [vmem:[%s2271_s15 + $0x7c] sm:$0xf] }
 0x110   : >> { %v714_v0 = vmul.f32 %v1204_v58, %v713_v57  ;;  %v740_v5 = vrot.slane %v2163_v6, %v2275_v31  ;;  %v749_v19 = vrot.slane %v2165_v7, %v2265_v27  ;;  %v758_v23 = vrot.slane %v2165_v7, %v2267_v28  ;;  %v1218_v35 = vld [vmem:[%s2271_s15 + $0x50] sm:$0xf]  ;;  %v1220_v39 = vld [vmem:[%s2271_s15 + $0x68] sm:$0xf]  ;;  %s1243_s7 = sshll.u32 (%p629_p11), %s2556_s8, 2  ;;  %s1244_s9 = sshll.u32 (%p629_p11), %s2557_s10, 4 }
 0x111   : >> { %v659_v47 = vadd.f32 %v658_v41, %v650_v43  ;;  %v723_v4 = vmul.f32 %v1206_v62, %v722_v61  ;;  %v732_v14 = vmul.f32 %v1208_v2, %v731_v1  ;;  %v767_v29 = vrot.slane %v2165_v7, %v2275_v31  ;;  %v1222_v43 = vld [vmem:[%s2271_s15 + $0x80] sm:$0xf]  ;;  %s901_s3 = sadd.s32 (%p629_p11), %s1244_s9, %s1243_s7  ;;  %s2561_s17 = smov (%p629_p11), %s2560_s22 }
 0x112   : >> { %v741_v22 = vmul.f32 %v1210_v12, %v740_v5  ;;  %v750_v26 = vmul.f32 %v1212_v20, %v749_v19  ;;  %v759_v33 = vmul.f32 %v1214_v24, %v758_v23  ;;  %v776_v34 = vrot.slane %v2167_v8, %v2265_v27  ;;  %s1245_s25 = sshll.u32 (%p629_p11), %s901_s3, 6  ;;  %s1526_s21 = scalar_lea.vmem (%p629_p11), %s2369_s13, 256 }
 0x113   : >> { %v669_v51 = vadd.f32 %v668_v44, %v659_v47  ;;  %v768_v37 = vmul.f32 %v1216_v30, %v767_v29  ;;  %v785_v38 = vrot.slane %v2167_v8, %v2267_v28  ;;  %v794_v42 = vrot.slane %v2167_v8, %v2275_v31  ;;  %v1224_v47 = vld [vmem:[%s2271_s15 + $0x90] sm:$0xf]  ;;  %s2374_s29 = scalar_lea.hbm (%p629_p11), %s2560_s22, %s1245_s25  ;;  %p1527_p2 = scmp.ne.s32.totalorder (%p629_p11), %s2369_s13, %s1526_s21 }
 0x114   : >> { %v777_v41 = vmul.f32 %v1218_v35, %v776_v34  ;;  %v803_v46 = vrot.slane %v2175_v15, %v2265_v27  ;;  %v812_v50 = vrot.slane %v2175_v15, %v2267_v28  ;;  %v821_v54 = vrot.slane %v2175_v15, %v2275_v31  ;;  %p2562_p8 = scmp.ne.s32.totalorder (%p629_p11), %s2559_s2, 0  ;;  %s1701_s24 = smov (%p629_p11), [#allocation11]  }
 0x115   : >> { %v678_v55 = vadd.f32 %v677_v48, %v669_v51  ;;  %v786_v45 = vmul.f32 %v1220_v39, %v785_v38  ;;  %v795_v49 = vmul.f32 %v1222_v43, %v794_v42  ;;  %v1226_v51 = vld [vmem:[%s2271_s15 + $0xa8] sm:$0xf]  ;;  %v830_v58 = vrot.slane %v2177_v16, %v2265_v27  ;;  %s1530_s30 = sshll.u32 (%p629_p11), %s1701_s24, 4  ;;  %s1531_s30 = int_to_ptr.vmem [resolvable:$false] %s1530_s30 }
 0x116   : >> { %v804_v53 = vmul.f32 %v1224_v47, %v803_v46  ;;  %v813_v57 = vmul.f32 %v1226_v51, %v812_v50  ;;  %v839_v62 = vrot.slane %v2177_v16, %v2267_v28  ;;  %v848_v2 = vrot.slane %v2177_v16, %v2275_v31  ;;  %p1528_p6 = pnand (%p629_p11), %p1527_p2, %p2562_p8  ;;  %s1532_s16 = scalar_lea.vmem (%p629_p11), %s1531_s30, 512 }
 0x117   : >> { %v687_v59 = vadd.f32 %v686_v52, %v678_v55  ;;  %v1228_v55 = vld [vmem:[%s2271_s15 + $0xc0] sm:$0xf]  ;;  %v857_v12 = vrot.slane %v2179_v17, %v2265_v27  ;;  %v866_v20 = vrot.slane %v2179_v17, %v2267_v28  ;;  %v875_v24 = vrot.slane %v2179_v17, %v2275_v31  ;;  %p1533_p4 = scmp.lt.s32.totalorder (%p629_p11), %s2369_s13, %s1531_s30  ;;  %p1534_p1 = scmp.lt.s32.totalorder (%p629_p11), %s1532_s16, %s1526_s21 }
 0x118   : >> { %v822_v61 = vmul.f32 %v1228_v55, %v821_v54  ;;  %p1529_p0 = pneg (%p629_p11), %p1528_p6 }
 0x119   : >> { %v697_v63 = vadd.f32 %v696_v56, %v687_v59  ;;  %v1230_v59 = vld [vmem:[%s2271_s15 + $0x94] sm:$0xf]  ;;  %p1535_p13 = por (%p629_p11), %p1534_p1, %p1533_p4 }
 0x11a   : >> { %v831_v1 = vmul.f32 %v1230_v59, %v830_v58 }
 0x11b   : >> { %v706_v3 = vadd.f32 %v705_v60, %v697_v63  ;;  %v1232_v63 = vld [vmem:[%s2271_s15 + $0xac] sm:$0xf]  ;;  %p1536_p5 = pnand (%p629_p11), %p1535_p13, %p1529_p0 }
 0x11c   : >> { %v840_v5 = vmul.f32 %v1232_v63, %v839_v62 }
 0x11d   : >> { %v715_v13 = vadd.f32 %v714_v0, %v706_v3  ;;  %v1234_v3 = vld [vmem:[%s2271_s15 + $0xc4] sm:$0xf] }
 0x11e   : >> { %v849_v19 = vmul.f32 %v1234_v3, %v848_v2 }
 0x11f   : >> { %v724_v21 = vadd.f32 %v723_v4, %v715_v13  ;;  %v1236_v13 = vld [vmem:[%s2271_s15 + $0x98] sm:$0xf] }
 0x120   : >> { %v858_v23 = vmul.f32 %v1236_v13, %v857_v12 }
 0x121   : >> { %v733_v25 = vadd.f32 %v732_v14, %v724_v21  ;;  %v1238_v21 = vld [vmem:[%s2271_s15 + $0xb0] sm:$0xf] }
 0x122   : >> { %v867_v29 = vmul.f32 %v1238_v21, %v866_v20 }
 0x123   : >> { %v742_v32 = vadd.f32 %v741_v22, %v733_v25  ;;  %v1240_v25 = vld [vmem:[%s2271_s15 + $0xc8] sm:$0xf] }
 0x125   : >> { %v751_v36 = vadd.f32 %v750_v26, %v742_v32  ;;  %v876_v32 = vmul.f32 %v1240_v25, %v875_v24 }
 0x127   : >> { %v760_v40 = vadd.f32 %v759_v33, %v751_v36 }
 0x129   : >> { %v769_v44 = vadd.f32 %v768_v37, %v760_v40 }
 0x12b   : >> { %v778_v48 = vadd.f32 %v777_v41, %v769_v44 }
 0x12d   : >> { %v787_v52 = vadd.f32 %v786_v45, %v778_v48 }
 0x12f   : >> { %v796_v56 = vadd.f32 %v795_v49, %v787_v52 }
 0x131   : >> { %v805_v60 = vadd.f32 %v804_v53, %v796_v56 }
 0x133   : >> { %v814_v0 = vadd.f32 %v813_v57, %v805_v60 }
 0x135   : >> { %v823_v4 = vadd.f32 %v822_v61, %v814_v0 }
 0x137   : >> { %v832_v14 = vadd.f32 %v831_v1, %v823_v4 }
 0x139   : >> { %v841_v22 = vadd.f32 %v840_v5, %v832_v14 }
 0x13b   : >> { %v850_v26 = vadd.f32 %v849_v19, %v841_v22 }
 0x13d   : >> { %v859_v30 = vadd.f32 %v858_v23, %v850_v26 }
 0x13f   : >> { %v868_v27 = vadd.f32 %v867_v29, %v859_v30  ;;  %631 = sbr.rel (!%p629_p11) target bundleno = 261 (0x105), region = 178 }
 0x141   : >> { %v877_v33 = vadd.f32 %v876_v32, %v868_v27 }
 0x143   : >> { %v884_v34 = vadd.f32 %v2184_v18, %v877_v33 }
 0x145   : >> { %886 = vst.msk [vmem:[%s885_s0] sm:$0xf] %vm470_vm0, %v884_v34 }
 0x146   : > { %1539 = shalt.err (!%p1536_p5)
}
 0x147   : > { %s1540_s27 = scalar_lea.hbm %s2374_s29, 256  ;;  %s1544_s0 = scalar_lea.hbm %s2561_s17, 2048 }
 0x148   : > { %p1541_p3 = scmp.ne.s32.totalorder %s2374_s29, %s1540_s27  ;;  %p1545_p7 = scmp.lt.u32.totalorder %s2374_s29, %s2561_s17 }
 0x149   : > { %p1546_p10 = scmp.lt.u32.totalorder %s1544_s0, %s1540_s27  ;;  %p1548_p2 = scmp.lt.u32.totalorder %s1540_s27, %s2374_s29 }
 0x14a   : > { %p1542_p9 = pnand %p1541_p3, %p2562_p8 }
 0x14b   : > { %p1547_p11 = por %p1546_p10, %p1545_p7 }
 0x14c   : > { %p1543_p12 = pneg %p1542_p9 }
 0x14d   : > { %p1549_p6 = por %p1548_p2, %p1547_p11 }
 0x14f   : > { %p1550_p0 = pnand %p1549_p6, %p1543_p12 }
 0x151   : > { %1553 = shalt.err (!%p1550_p0)
}
 0x152   : > { %s1702_s1 = smov 64   ;;  %s1703_s7 = smov 4  }
 0x153   : > { %1258 = dma.vmem_to_hbm [thread:$0]  (%p2562_p8), %s2369_s13, 256, %s2374_s29, %s2378_s4, %s1702_s1, %s1702_s1, %s1703_s7  }
 0x154 PF: > { %s2563_s9 = sld [smem:[#allocation18_spill]]  ;;  %s2564_s3 = sld [smem:[#allocation26_spill]] }
 0x155   : > { %p1281_p4 = scmp.ge.s32.totalorder %s1688_s6, 2 }
 0x15a   : > { %s919_s25 = sand.u32 1, %s2563_s9   ;;  %p2565_p1 = scmp.ne.s32.totalorder %s2564_s3, 0 }
 0x15b   : > { %s920_s28 = scalar_lea.sflag [#allocation5], %s919_s25 }
 0x15c   : > { %p1275_p13 = pnand %p1281_p4, %p2565_p1 }
 0x15e   : > { %1631 = dma.done.wait (!%p1275_p13), %s920_s28, 256  }
 0x15f   : > { %1633 = vsyncadd (!%p1275_p13), %s920_s28, 4294967040  ;;  %s25_s6 = sadd.s32 1, %s1688_s6   ;;  %s2567_s21 = sld [smem:[#allocation19_spill]] }
 0x160   : > { %p2407_p5 = scmp.ge.s32.totalorder %s25_s6, 10   ;;  %s2568_s2 = smov %s1989_s18 }
 0x161   : > { %s2569_s24 = sld [smem:[#allocation20_spill]]  ;;  %s2570_s13 = sld [smem:[#allocation32_spill]] }
 0x162   : > { %s2571_s27 = sld [smem:[#allocation23_spill]]  ;;  %s2572_s28 = sld [smem:[#allocation24_spill]] }
 0x163   : > { %s2573_s29 = sld [smem:[#allocation25_spill]]  ;;  %s2574_s30 = sld [smem:[#allocation31_spill]] }
 0x164   : > { %s2575_s18 = smov %s1640_s19  ;;  %s2576_s19 = smov %s1644_s20 }
 0x165   : > { %s2577_s20 = smov %s2062_s14  ;;  %s2578_s22 = smov %s1656_s23 }
 0x166   : > { %s2579_s23 = smov %s2568_s2  ;;  %s2580_s25 = smov %s1668_s26 }
 0x167   : > { %s2581_s26 = smov %s2570_s13  ;;  %24 = sbr.rel (!%p2407_p5) target bundleno = 20 (0x14), region = 189 }
 0x16e   :  { %925 = vsyncpa [#allocation4], 1 }
 0x16f   :  { %927 = vsyncpa [#allocation4 + $0x1], 1 }
 0x170   :  { %928 = vsyncpa [#allocation7], 1 }
 0x171   :  { %930 = vsyncpa [#allocation7 + $0x1], 1 }
 0x172   :  { %931 = vsyncpa [#allocation10], 1 }
 0x173   :  { %932 = vsyncpa [#allocation5], 1 }
 0x174   :  { %934 = vsyncpa [#allocation5 + $0x1], 1 }

</bundles_post_ra>
